<compile_context>
chip_gen: v7x
topology: tpu7x:2x2x1
jax: 0.10.0
libtpu: 0.0.40
codegen_flags: <defaults>
</compile_context>

<pallas_src>
import functools

import jax
import jax.numpy as jnp
from jax.experimental import pallas as pl
from jax.experimental.pallas import tpu as pltpu


# --------------------------------------------------------------------------- helpers

def _nbytes(shape, dtype):
    size = 1
    for d in shape:
        size *= int(d)
    return size * jnp.dtype(dtype).itemsize


def _vmem_limit(block_defs, scratch_bytes):
    """Scoped-VMEM limit from pipelined block sizes (x2 double buffer) + scratch + headroom."""
    est = 2 * sum(_nbytes(s, d) for s, d in block_defs) + scratch_bytes
    est += 4 * 1024 * 1024  # headroom for Mosaic internal scratch
    # Floor at 32 MiB (>= default everywhere), ceiling 48 MiB (safe on v7x's 64 MiB physical).
    return int(min(max(est, 32 * 1024 * 1024), 48 * 1024 * 1024))


def _pick_token_tile(n_tokens):
    # Roofline: arithmetic intensity of the dense-expert pass ~ tn FLOP/byte of streamed
    # expert weights.  Target large tn (<= 512) subject to VMEM; full N at toy sizes.
    target = 512
    if n_tokens <= target:
        return n_tokens
    for tn in range(target, 7, -1):
        if n_tokens % tn == 0 and tn % 8 == 0:
            return tn
    return n_tokens


# --------------------------------------------------------------------------- kernel 1
# fused:  QKV proj -> per-head attention -> single out-proj GEMM -> residual + LN1
#         -> router (softmax / top-k / renormalized gates) -> in-kernel LB partial sums

def _attn_ln_router_kernel(x_ref, wqkv_ref, bqkv_ref, wo_ref, bo_ref,
                           ln1_g_ref, ln1_b_ref, wg_ref, bg_ref,
                           x1_ref, gates_ref, lb_ref,
                           qkv_scr, attn_scr,
                           *, n_heads, top_k):
    Bt, T, D = x_ref.shape
    M = Bt * T
    dh = D // n_heads
    scale = 1.0 / (dh ** 0.5)

    x = x_ref[...]                                   # (Bt, T, D) fp32 residual
    x2d = x.reshape(M, D)
    xb = x2d.astype(jnp.bfloat16)

    # fused QKV projection: one wide MXU pass with M = Bt*T, staged in VMEM scratch
    qkv_scr[...] = (jnp.dot(xb, wqkv_ref[...], preferred_element_type=jnp.float32)
                    + bqkv_ref[...])

    # per-head attention; each head's output is written to its contiguous lane slice of the
    # bf16 scratch so ONE full-K (M,D)x(D,D) out-projection GEMM can be issued afterwards.
    for h in range(n_heads):                         # static loop, n_heads small
        qh = (qkv_scr[:, pl.ds(h * dh, dh)] * scale).astype(jnp.bfloat16).reshape(Bt, T, dh)
        kh = qkv_scr[:, pl.ds(D + h * dh, dh)].astype(jnp.bfloat16).reshape(Bt, T, dh)
        vh = qkv_scr[:, pl.ds(2 * D + h * dh, dh)].astype(jnp.bfloat16).reshape(Bt, T, dh)

        s = jnp.einsum('bqd,bkd->bqk', qh, kh,
                       preferred_element_type=jnp.float32)                 # (Bt, T, T)
        s = s - jnp.max(s, axis=-1, keepdims=True)
        pmat = jnp.exp(s)
        pmat = pmat * pl.reciprocal(jnp.sum(pmat, axis=-1, keepdims=True), approx=True)
        oh = jnp.einsum('bqk,bkd->bqd', pmat.astype(jnp.bfloat16), vh,
                        preferred_element_type=jnp.float32)                # (Bt, T, dh)
        attn_scr[:, pl.ds(h * dh, dh)] = oh.reshape(M, dh).astype(jnp.bfloat16)

    # single full-contraction out-projection GEMM (K = D, one accumulator)
    h_out = (jnp.dot(attn_scr[...], wo_ref[...], preferred_element_type=jnp.float32)
             + bo_ref[...])

    # residual + LayerNorm1 (fp32, biased variance, eps=1e-5 like PyTorch)
    s1 = x2d + h_out
    mu = jnp.mean(s1, axis=-1, keepdims=True)
    var = jnp.mean((s1 - mu) * (s1 - mu), axis=-1, keepdims=True)
    x1 = (s1 - mu) * jax.lax.rsqrt(var + 1e-5) * ln1_g_ref[...] + ln1_b_ref[...]
    x1_ref[...] = x1.reshape(Bt, T, D)               # single lane-dense store

    # ---- router: gate linear + softmax + top-k + renormalize (exact division) ----
    logits = (jnp.dot(x1.astype(jnp.bfloat16), wg_ref[...],
                      preferred_element_type=jnp.float32) + bg_ref[...])   # (M, E)
    logits = logits - jnp.max(logits, axis=-1, keepdims=True)
    pe = jnp.exp(logits)
    probs = pe / jnp.sum(pe, axis=-1, keepdims=True)

    n_experts = probs.shape[-1]
    iota_e = jax.lax.broadcasted_iota(jnp.int32, probs.shape, 1)
    remaining = probs
    mask = jnp.zeros_like(probs)
    for _ in range(top_k):                           # static, top_k small
        mval = jnp.max(remaining, axis=-1, keepdims=True)
        first = jnp.min(jnp.where(remaining == mval, iota_e, n_experts),
                        axis=-1, keepdims=True)      # lowest-index argmax (tie-safe)
        sel = (iota_e == first).astype(probs.dtype)
        mask = mask + sel
        remaining = jnp.where(sel > 0, -jnp.inf, remaining)

    masked = probs * mask
    gates = masked / jnp.sum(masked, axis=-1, keepdims=True)   # exact renormalization
    gates_ref[...] = gates.reshape(Bt, T, E_ := n_experts)

    # load-balancing partial reductions (per batch row): [sum_T mask ; sum_T probs]
    mask3 = mask.reshape(Bt, T, E_)
    probs3 = probs.reshape(Bt, T, E_)
    lb_ref[...] = jnp.concatenate(
        [jnp.sum(mask3, axis=1, keepdims=True),
         jnp.sum(probs3, axis=1, keepdims=True)], axis=1)       # (Bt, 2, E)


def attn_ln_router(x, p, n_heads, top_k, batch_tile=1):
    B, T, D = x.shape
    E = p["wg"].shape[1]
    Bt = batch_tile
    assert B % Bt == 0, "batch_tile must divide batch"

    def full_spec(arr):
        return pl.BlockSpec(arr.shape, lambda b: (0, 0))

    block_defs = [
        ((Bt, T, D), jnp.float32),
        (p["wqkv"].shape, p["wqkv"].dtype), (p["bqkv"].shape, p["bqkv"].dtype),
        (p["wo"].shape, p["wo"].dtype), (p["bo"].shape, p["bo"].dtype),
        (p["ln1_g"].shape, p["ln1_g"].dtype), (p["ln1_b"].shape, p["ln1_b"].dtype),
        (p["wg"].shape, p["wg"].dtype), (p["bg"].shape, p["bg"].dtype),
        ((Bt, T, D), jnp.float32), ((Bt, T, E), jnp.float32), ((Bt, 2, E), jnp.float32),
    ]
    scratch_bytes = (_nbytes((Bt * T, 3 * D), jnp.float32)
                     + _nbytes((Bt * T, D), jnp.bfloat16))

    grid_spec = pltpu.PrefetchScalarGridSpec(
        num_scalar_prefetch=0,
        grid=(B // Bt,),
        in_specs=[
            pl.BlockSpec((Bt, T, D), lambda b: (b, 0, 0)),
            full_spec(p["wqkv"]), full_spec(p["bqkv"]),
            full_spec(p["wo"]), full_spec(p["bo"]),
            full_spec(p["ln1_g"]), full_spec(p["ln1_b"]),
            full_spec(p["wg"]), full_spec(p["bg"]),
        ],
        out_specs=[
            pl.BlockSpec((Bt, T, D), lambda b: (b, 0, 0)),
            pl.BlockSpec((Bt, T, E), lambda b: (b, 0, 0)),
            pl.BlockSpec((Bt, 2, E), lambda b: (b, 0, 0)),
        ],
        scratch_shapes=[
            pltpu.VMEM((Bt * T, 3 * D), jnp.float32),   # staged qkv
            pltpu.VMEM((Bt * T, D), jnp.bfloat16),      # concatenated head outputs
        ],
    )
    return pl.pallas_call(
        functools.partial(_attn_ln_router_kernel, n_heads=n_heads, top_k=top_k),
        out_shape=(
            jax.ShapeDtypeStruct((B, T, D), jnp.float32),
            jax.ShapeDtypeStruct((B, T, E), jnp.float32),
            jax.ShapeDtypeStruct((B, 2, E), jnp.float32),
        ),
        grid_spec=grid_spec,
        compiler_params=pltpu.CompilerParams(
            dimension_semantics=("parallel",),
            vmem_limit_bytes=_vmem_limit(block_defs, scratch_bytes)),
    )(x, p["wqkv"], p["bqkv"], p["wo"], p["bo"],
      p["ln1_g"], p["ln1_b"], p["wg"], p["bg"])


# --------------------------------------------------------------------------- kernel 2
# fused:  streamed expert FFNs (weighted by per-expert gate column) -> residual + LN2
# grid = (token tiles [parallel], experts [arbitrary]); expert weights streamed per grid step.

def _moe_ln_kernel(x1_ref, gate_ref, w1_ref, b1_ref, w2_ref, b2_ref,
                   ln2_g_ref, ln2_b_ref, x2_ref, acc_ref):
    e = pl.program_id(1)
    n_e = pl.num_programs(1)

    @pl.when(e == 0)
    def _():
        acc_ref[...] = jnp.zeros_like(acc_ref)

    x1 = x1_ref[...]                                 # (tn, D) fp32
    xb = x1.astype(jnp.bfloat16)
    gate_col = gate_ref[0]                           # (tn, 1) — this expert's gates only

    h = jnp.dot(xb, w1_ref[0], preferred_element_type=jnp.float32) + b1_ref[0]
    h = jnp.maximum(h, 0.0)                          # ReLU
    y = jnp.dot(h.astype(jnp.bfloat16), w2_ref[0],
                preferred_element_type=jnp.float32) + b2_ref[0]
    acc_ref[...] += gate_col * y

    @pl.when(e == n_e - 1)
    def _():
        s = x1 + acc_ref[...]                        # residual (fp32)
        mu = jnp.mean(s, axis=-1, keepdims=True)
        var = jnp.mean((s - mu) * (s - mu), axis=-1, keepdims=True)
        x2_ref[...] = ((s - mu) * jax.lax.rsqrt(var + 1e-5)
                       * ln2_g_ref[...] + ln2_b_ref[...])


def moe_ln(x1, gate_cols, p):
    N, D = x1.shape
    E, _, F = p["w1"].shape
    tn = _pick_token_tile(N)
    grid = (N // tn, E)

    block_defs = [
        ((tn, D), jnp.float32), ((1, tn, 1), jnp.float32),
        ((1, D, F), p["w1"].dtype), ((1, 1, F), jnp.float32),
        ((1, F, D), p["w2"].dtype), ((1, 1, D), jnp.float32),
        ((1, D), jnp.float32), ((1, D), jnp.float32),
        ((tn, D), jnp.float32),
    ]
    scratch_bytes = _nbytes((tn, D), jnp.float32)

    grid_spec = pltpu.PrefetchScalarGridSpec(
        num_scalar_prefetch=0,
        grid=grid,
        in_specs=[
            pl.BlockSpec((tn, D), lambda i, e: (i, 0)),
            pl.BlockSpec((1, tn, 1), lambda i, e: (e, i, 0)),    # this expert's gate column
            pl.BlockSpec((1, D, F), lambda i, e: (e, 0, 0)),     # per-expert weight streaming
            pl.BlockSpec((1, 1, F), lambda i, e: (e, 0, 0)),
            pl.BlockSpec((1, F, D), lambda i, e: (e, 0, 0)),
            pl.BlockSpec((1, 1, D), lambda i, e: (e, 0, 0)),
            pl.BlockSpec((1, D), lambda i, e: (0, 0)),
            pl.BlockSpec((1, D), lambda i, e: (0, 0)),
        ],
        out_specs=pl.BlockSpec((tn, D), lambda i, e: (i, 0)),
        scratch_shapes=[pltpu.VMEM((tn, D), jnp.float32)],
    )
    return pl.pallas_call(
        _moe_ln_kernel,
        out_shape=jax.ShapeDtypeStruct((N, D), jnp.float32),
        grid_spec=grid_spec,
        compiler_params=pltpu.CompilerParams(
            dimension_semantics=("parallel", "arbitrary"),
            vmem_limit_bytes=_vmem_limit(block_defs, scratch_bytes)),
    )(x1, gate_cols, p["w1"], p["b1"], p["w2"], p["b2"], p["ln2_g"], p["ln2_b"])


# --------------------------------------------------------------------------- block glue

def encoder_block(x, p, n_heads, top_k, batch_tile=1):
    B, T, D = x.shape
    E = p["wg"].shape[1]
    N = B * T

    x1, gates, lb_part = attn_ln_router(x, p, n_heads, top_k, batch_tile)

    # per-expert gate columns (E, N, 1): each expert grid step DMAs only its own gate row
    gate_cols = jnp.transpose(gates.reshape(N, E)).reshape(E, N, 1)
    x2 = moe_ln(x1.reshape(N, D), gate_cols, p)

    # switch-transformer style load-balancing loss from in-kernel partial sums (tiny scalar)
    sum_mask = jnp.sum(lb_part[:, 0, :], axis=0)     # (E,)  = sum over tokens of top-k mask
    sum_probs = jnp.sum(lb_part[:, 1, :], axis=0)    # (E,)  = sum over tokens of router probs
    frac = sum_mask / (N * top_k)
    prob_mass = sum_probs / N
    lb = E * jnp.sum(frac * prob_mass)

    return x2.reshape(B, T, D), lb


# --------------------------------------------------------------------------- params

def init_params(key, *, dim, n_experts, ffn_dim):
    D, E, F = dim, n_experts, ffn_dim

    def nrm(k, shape):
        return 0.02 * jax.random.normal(k, shape, jnp.float32)

    ks = jax.random.split(key, 7)
    wq, wk, wv = nrm(ks[0], (D, D)), nrm(ks[1], (D, D)), nrm(ks[2], (D, D))
    # MXU operands stored in bf16 (fp32 accumulation inside kernels); LN/bias kept fp32.
    return {
        "wqkv": jnp.concatenate([wq, wk, wv], axis=1).astype(jnp.bfloat16),  # (D, 3D)
        "bqkv": jnp.zeros((1, 3 * D), jnp.float32),
        "wo": nrm(ks[3], (D, D)).astype(jnp.bfloat16),
        "bo": jnp.zeros((1, D), jnp.float32),
        "ln1_g": jnp.ones((1, D), jnp.float32),
        "ln1_b": jnp.zeros((1, D), jnp.float32),
        "wg": nrm(ks[4], (D, E)).astype(jnp.bfloat16),
        "bg": jnp.zeros((1, E), jnp.float32),
        "w1": nrm(ks[5], (E, D, F)).astype(jnp.bfloat16),
        "b1": jnp.zeros((E, 1, F), jnp.float32),
        "w2": nrm(ks[6], (E, F, D)).astype(jnp.bfloat16),
        "b2": jnp.zeros((E, 1, D), jnp.float32),
        "ln2_g": jnp.ones((1, D), jnp.float32),
        "ln2_b": jnp.zeros((1, D), jnp.float32),
    }


# --------------------------------------------------------------------------- main

if __name__ == "__main__":
    DIM = 32
    N_HEADS = 4
    N_EXPERTS = 4
    TOP_K = 2
    FFN_DIM = 4 * DIM
    B, T = 2, 8

    root = jax.random.PRNGKey(0)
    k_par, k_x = jax.random.split(root)
    params = init_params(k_par, dim=DIM, n_experts=N_EXPERTS, ffn_dim=FFN_DIM)
    x = jax.random.normal(k_x, (B, T, DIM), jnp.float32)

    fwd = jax.jit(functools.partial(encoder_block, n_heads=N_HEADS, top_k=TOP_K,
                                    batch_tile=1))
    out, lb_loss = fwd(x, params)
    jax.block_until_ready(out)
    jax.block_until_ready(lb_loss)

    assert out.shape == (B, T, DIM)
    assert lb_loss.shape == ()
    print("KERNEL_OK")
</pallas_src>

<mosaic_0001>
module attributes {stable_mosaic.version = 11 : i64} {
  func.func @_attn_ln_router_kernel(%arg0: i32, %arg1: memref<1x8x32xf32, #tpu.memory_space<vmem>>, %arg2: memref<32x96xbf16, #tpu.memory_space<vmem>>, %arg3: memref<1x96xf32, #tpu.memory_space<vmem>>, %arg4: memref<32x32xbf16, #tpu.memory_space<vmem>>, %arg5: memref<1x32xf32, #tpu.memory_space<vmem>>, %arg6: memref<1x32xf32, #tpu.memory_space<vmem>>, %arg7: memref<1x32xf32, #tpu.memory_space<vmem>>, %arg8: memref<32x4xbf16, #tpu.memory_space<vmem>>, %arg9: memref<1x4xf32, #tpu.memory_space<vmem>>, %arg10: memref<1x8x32xf32, #tpu.memory_space<vmem>>, %arg11: memref<1x8x4xf32, #tpu.memory_space<vmem>>, %arg12: memref<1x2x4xf32, #tpu.memory_space<vmem>>, %arg13: memref<8x96xf32, #tpu.memory_space<vmem>>, %arg14: memref<8x32xbf16, #tpu.memory_space<vmem>>) attributes {dimension_semantics = [#tpu.dimension_semantics<parallel>], iteration_bounds = array<i64: 2>, scalar_prefetch = 0 : i64, scratch_operands = 2 : i64, tpu.core_type = #tpu.core_type<tc>, window_params = [{transform_indices = @transform_0, window_bounds = array<i64: 1, 8, 32>}, {pipeline_mode = #tpu.pipeline_mode<synchronous>, transform_indices = @transform_1, window_bounds = array<i64: 32, 96>}, {pipeline_mode = #tpu.pipeline_mode<synchronous>, transform_indices = @transform_2, window_bounds = array<i64: 1, 96>}, {pipeline_mode = #tpu.pipeline_mode<synchronous>, transform_indices = @transform_3, window_bounds = array<i64: 32, 32>}, {pipeline_mode = #tpu.pipeline_mode<synchronous>, transform_indices = @transform_4, window_bounds = array<i64: 1, 32>}, {pipeline_mode = #tpu.pipeline_mode<synchronous>, transform_indices = @transform_5, window_bounds = array<i64: 1, 32>}, {pipeline_mode = #tpu.pipeline_mode<synchronous>, transform_indices = @transform_6, window_bounds = array<i64: 1, 32>}, {pipeline_mode = #tpu.pipeline_mode<synchronous>, transform_indices = @transform_7, window_bounds = array<i64: 32, 4>}, {pipeline_mode = #tpu.pipeline_mode<synchronous>, transform_indices = @transform_8, window_bounds = array<i64: 1, 4>}, {transform_indices = @transform_9, window_bounds = array<i64: 1, 8, 32>}, {transform_indices = @transform_10, window_bounds = array<i64: 1, 8, 4>}, {transform_indices = @transform_11, window_bounds = array<i64: 1, 2, 4>}]} {
    %c0 = arith.constant 0 : index
    %c0_0 = arith.constant 0 : index
    %c0_1 = arith.constant 0 : index
    %0 = vector.load %arg1[%c0, %c0_0, %c0_1] : memref<1x8x32xf32, #tpu.memory_space<vmem>>, vector<1x8x32xf32>
    %1 = vector.shape_cast %0 : vector<1x8x32xf32> to vector<8x32xf32>
    %2 = arith.truncf %1 : vector<8x32xf32> to vector<8x32xbf16>
    %c0_2 = arith.constant 0 : index
    %c0_3 = arith.constant 0 : index
    %3 = vector.load %arg2[%c0_2, %c0_3] : memref<32x96xbf16, #tpu.memory_space<vmem>>, vector<32x96xbf16>
    %cst = arith.constant dense<0.000000e+00> : vector<8x96xf32>
    %4 = tpu.matmul %2, %3, %cst {dimension_numbers = #tpu.dot_dimension_numbers<[1], [0], [0], [1], [0, 0, 1, 1], [], []>} : vector<8x32xbf16>, vector<32x96xbf16>, vector<8x96xf32> -> vector<8x96xf32>
    %c0_4 = arith.constant 0 : index
    %c0_5 = arith.constant 0 : index
    %5 = vector.load %arg3[%c0_4, %c0_5] : memref<1x96xf32, #tpu.memory_space<vmem>>, vector<1x96xf32>
    %6 = vector.broadcast %5 : vector<1x96xf32> to vector<8x96xf32>
    %7 = arith.addf %4, %6 : vector<8x96xf32>
    %c0_6 = arith.constant 0 : index
    %c0_7 = arith.constant 0 : index
    %8 = vector.load %arg13[%c0_6, %c0_7] : memref<8x96xf32, #tpu.memory_space<vmem>>, vector<8x96xf32>
    tpu.vector_store %arg13[%c0_6, %c0_7], %7 {strides = array<i32>} : memref<8x96xf32, #tpu.memory_space<vmem>>, vector<8x96xf32>,
    %c0_8 = arith.constant 0 : index
    %c0_9 = arith.constant 0 : index
    %9 = vector.load %arg13[%c0_8, %c0_9] : memref<8x96xf32, #tpu.memory_space<vmem>>, vector<8x8xf32>
    %cst_10 = arith.constant 0.353553385 : f32
    %10 = vector.broadcast %cst_10 : f32 to vector<8x8xf32>
    %11 = arith.mulf %9, %10 : vector<8x8xf32>
    %12 = arith.truncf %11 : vector<8x8xf32> to vector<8x8xbf16>
    %13 = vector.shape_cast %12 : vector<8x8xbf16> to vector<1x8x8xbf16>
    %c0_11 = arith.constant 0 : index
    %c32 = arith.constant 32 : index
    %14 = vector.load %arg13[%c0_11, %c32] : memref<8x96xf32, #tpu.memory_space<vmem>>, vector<8x8xf32>
    %15 = arith.truncf %14 : vector<8x8xf32> to vector<8x8xbf16>
    %16 = vector.shape_cast %15 : vector<8x8xbf16> to vector<1x8x8xbf16>
    %c0_12 = arith.constant 0 : index
    %c64 = arith.constant 64 : index
    %17 = vector.load %arg13[%c0_12, %c64] : memref<8x96xf32, #tpu.memory_space<vmem>>, vector<8x8xf32>
    %18 = arith.truncf %17 : vector<8x8xf32> to vector<8x8xbf16>
    %19 = vector.shape_cast %18 : vector<8x8xbf16> to vector<1x8x8xbf16>
    "tpu.trace_start"() <{level = 10 : i32, message = "bqd,bkd->bqk"}> : () -> ()
    %cst_13 = arith.constant dense<0.000000e+00> : vector<1x8x8xf32>
    %20 = tpu.matmul %13, %16, %cst_13 {dimension_numbers = #tpu.dot_dimension_numbers<[2], [2], [1], [1], [0, 0, 0, 1, 1, 1], [0], [0]>} : vector<1x8x8xbf16>, vector<1x8x8xbf16>, vector<1x8x8xf32> -> vector<1x8x8xf32>
    "tpu.trace_stop"() : () -> ()
    %cst_14 = arith.constant dense<0xFF800000> : vector<1x8xf32>
    %21 = vector.multi_reduction <maximumf>, %20, %cst_14 [2] : vector<1x8x8xf32> to vector<1x8xf32>
    %22 = vector.shape_cast %21 : vector<1x8xf32> to vector<1x8x1xf32>
    %23 = vector.broadcast %22 : vector<1x8x1xf32> to vector<1x8x8xf32>
    %24 = arith.subf %20, %23 : vector<1x8x8xf32>
    %25 = math.exp %24 : vector<1x8x8xf32>
    %cst_15 = arith.constant dense<0.000000e+00> : vector<1x8xf32>
    %26 = vector.multi_reduction <add>, %25, %cst_15 [2] : vector<1x8x8xf32> to vector<1x8xf32>
    %27 = vector.shape_cast %26 : vector<1x8xf32> to vector<1x8x1xf32>
    %28 = tpu.reciprocal %27 {approx = true} : vector<1x8x1xf32> -> vector<1x8x1xf32>
    %29 = vector.broadcast %28 : vector<1x8x1xf32> to vector<1x8x8xf32>
    %30 = arith.mulf %25, %29 : vector<1x8x8xf32>
    %31 = arith.truncf %30 : vector<1x8x8xf32> to vector<1x8x8xbf16>
    "tpu.trace_start"() <{level = 10 : i32, message = "bqk,bkd->bqd"}> : () -> ()
    %cst_16 = arith.constant dense<0.000000e+00> : vector<1x8x8xf32>
    %32 = tpu.matmul %31, %19, %cst_16 {dimension_numbers = #tpu.dot_dimension_numbers<[2], [1], [1], [2], [0, 0, 0, 1, 1, 2], [0], [0]>} : vector<1x8x8xbf16>, vector<1x8x8xbf16>, vector<1x8x8xf32> -> vector<1x8x8xf32>
    "tpu.trace_stop"() : () -> ()
    %33 = vector.shape_cast %32 : vector<1x8x8xf32> to vector<8x8xf32>
    %34 = arith.truncf %33 : vector<8x8xf32> to vector<8x8xbf16>
    %c0_17 = arith.constant 0 : index
    %c0_18 = arith.constant 0 : index
    %35 = vector.load %arg14[%c0_17, %c0_18] : memref<8x32xbf16, #tpu.memory_space<vmem>>, vector<8x8xbf16>
    tpu.vector_store %arg14[%c0_17, %c0_18], %34 {strides = array<i32>} : memref<8x32xbf16, #tpu.memory_space<vmem>>, vector<8x8xbf16>,
    %c0_19 = arith.constant 0 : index
    %c8 = arith.constant 8 : index
    %36 = vector.load %arg13[%c0_19, %c8] : memref<8x96xf32, #tpu.memory_space<vmem>>, vector<8x8xf32>
    %cst_20 = arith.constant 0.353553385 : f32
    %37 = vector.broadcast %cst_20 : f32 to vector<8x8xf32>
    %38 = arith.mulf %36, %37 : vector<8x8xf32>
    %39 = arith.truncf %38 : vector<8x8xf32> to vector<8x8xbf16>
    %40 = vector.shape_cast %39 : vector<8x8xbf16> to vector<1x8x8xbf16>
    %c0_21 = arith.constant 0 : index
    %c40 = arith.constant 40 : index
    %41 = vector.load %arg13[%c0_21, %c40] : memref<8x96xf32, #tpu.memory_space<vmem>>, vector<8x8xf32>
    %42 = arith.truncf %41 : vector<8x8xf32> to vector<8x8xbf16>
    %43 = vector.shape_cast %42 : vector<8x8xbf16> to vector<1x8x8xbf16>
    %c0_22 = arith.constant 0 : index
    %c72 = arith.constant 72 : index
    %44 = vector.load %arg13[%c0_22, %c72] : memref<8x96xf32, #tpu.memory_space<vmem>>, vector<8x8xf32>
    %45 = arith.truncf %44 : vector<8x8xf32> to vector<8x8xbf16>
    %46 = vector.shape_cast %45 : vector<8x8xbf16> to vector<1x8x8xbf16>
    "tpu.trace_start"() <{level = 10 : i32, message = "bqd,bkd->bqk"}> : () -> ()
    %cst_23 = arith.constant dense<0.000000e+00> : vector<1x8x8xf32>
    %47 = tpu.matmul %40, %43, %cst_23 {dimension_numbers = #tpu.dot_dimension_numbers<[2], [2], [1], [1], [0, 0, 0, 1, 1, 1], [0], [0]>} : vector<1x8x8xbf16>, vector<1x8x8xbf16>, vector<1x8x8xf32> -> vector<1x8x8xf32>
    "tpu.trace_stop"() : () -> ()
    %cst_24 = arith.constant dense<0xFF800000> : vector<1x8xf32>
    %48 = vector.multi_reduction <maximumf>, %47, %cst_24 [2] : vector<1x8x8xf32> to vector<1x8xf32>
    %49 = vector.shape_cast %48 : vector<1x8xf32> to vector<1x8x1xf32>
    %50 = vector.broadcast %49 : vector<1x8x1xf32> to vector<1x8x8xf32>
    %51 = arith.subf %47, %50 : vector<1x8x8xf32>
    %52 = math.exp %51 : vector<1x8x8xf32>
    %cst_25 = arith.constant dense<0.000000e+00> : vector<1x8xf32>
    %53 = vector.multi_reduction <add>, %52, %cst_25 [2] : vector<1x8x8xf32> to vector<1x8xf32>
    %54 = vector.shape_cast %53 : vector<1x8xf32> to vector<1x8x1xf32>
    %55 = tpu.reciprocal %54 {approx = true} : vector<1x8x1xf32> -> vector<1x8x1xf32>
    %56 = vector.broadcast %55 : vector<1x8x1xf32> to vector<1x8x8xf32>
    %57 = arith.mulf %52, %56 : vector<1x8x8xf32>
    %58 = arith.truncf %57 : vector<1x8x8xf32> to vector<1x8x8xbf16>
    "tpu.trace_start"() <{level = 10 : i32, message = "bqk,bkd->bqd"}> : () -> ()
    %cst_26 = arith.constant dense<0.000000e+00> : vector<1x8x8xf32>
    %59 = tpu.matmul %58, %46, %cst_26 {dimension_numbers = #tpu.dot_dimension_numbers<[2], [1], [1], [2], [0, 0, 0, 1, 1, 2], [0], [0]>} : vector<1x8x8xbf16>, vector<1x8x8xbf16>, vector<1x8x8xf32> -> vector<1x8x8xf32>
    "tpu.trace_stop"() : () -> ()
    %60 = vector.shape_cast %59 : vector<1x8x8xf32> to vector<8x8xf32>
    %61 = arith.truncf %60 : vector<8x8xf32> to vector<8x8xbf16>
    %c0_27 = arith.constant 0 : index
    %c8_28 = arith.constant 8 : index
    %62 = vector.load %arg14[%c0_27, %c8_28] : memref<8x32xbf16, #tpu.memory_space<vmem>>, vector<8x8xbf16>
    tpu.vector_store %arg14[%c0_27, %c8_28], %61 {strides = array<i32>} : memref<8x32xbf16, #tpu.memory_space<vmem>>, vector<8x8xbf16>,
    %c0_29 = arith.constant 0 : index
    %c16 = arith.constant 16 : index
    %63 = vector.load %arg13[%c0_29, %c16] : memref<8x96xf32, #tpu.memory_space<vmem>>, vector<8x8xf32>
    %cst_30 = arith.constant 0.353553385 : f32
    %64 = vector.broadcast %cst_30 : f32 to vector<8x8xf32>
    %65 = arith.mulf %63, %64 : vector<8x8xf32>
    %66 = arith.truncf %65 : vector<8x8xf32> to vector<8x8xbf16>
    %67 = vector.shape_cast %66 : vector<8x8xbf16> to vector<1x8x8xbf16>
    %c0_31 = arith.constant 0 : index
    %c48 = arith.constant 48 : index
    %68 = vector.load %arg13[%c0_31, %c48] : memref<8x96xf32, #tpu.memory_space<vmem>>, vector<8x8xf32>
    %69 = arith.truncf %68 : vector<8x8xf32> to vector<8x8xbf16>
    %70 = vector.shape_cast %69 : vector<8x8xbf16> to vector<1x8x8xbf16>
    %c0_32 = arith.constant 0 : index
    %c80 = arith.constant 80 : index
    %71 = vector.load %arg13[%c0_32, %c80] : memref<8x96xf32, #tpu.memory_space<vmem>>, vector<8x8xf32>
    %72 = arith.truncf %71 : vector<8x8xf32> to vector<8x8xbf16>
    %73 = vector.shape_cast %72 : vector<8x8xbf16> to vector<1x8x8xbf16>
    "tpu.trace_start"() <{level = 10 : i32, message = "bqd,bkd->bqk"}> : () -> ()
    %cst_33 = arith.constant dense<0.000000e+00> : vector<1x8x8xf32>
    %74 = tpu.matmul %67, %70, %cst_33 {dimension_numbers = #tpu.dot_dimension_numbers<[2], [2], [1], [1], [0, 0, 0, 1, 1, 1], [0], [0]>} : vector<1x8x8xbf16>, vector<1x8x8xbf16>, vector<1x8x8xf32> -> vector<1x8x8xf32>
    "tpu.trace_stop"() : () -> ()
    %cst_34 = arith.constant dense<0xFF800000> : vector<1x8xf32>
    %75 = vector.multi_reduction <maximumf>, %74, %cst_34 [2] : vector<1x8x8xf32> to vector<1x8xf32>
    %76 = vector.shape_cast %75 : vector<1x8xf32> to vector<1x8x1xf32>
    %77 = vector.broadcast %76 : vector<1x8x1xf32> to vector<1x8x8xf32>
    %78 = arith.subf %74, %77 : vector<1x8x8xf32>
    %79 = math.exp %78 : vector<1x8x8xf32>
    %cst_35 = arith.constant dense<0.000000e+00> : vector<1x8xf32>
    %80 = vector.multi_reduction <add>, %79, %cst_35 [2] : vector<1x8x8xf32> to vector<1x8xf32>
    %81 = vector.shape_cast %80 : vector<1x8xf32> to vector<1x8x1xf32>
    %82 = tpu.reciprocal %81 {approx = true} : vector<1x8x1xf32> -> vector<1x8x1xf32>
    %83 = vector.broadcast %82 : vector<1x8x1xf32> to vector<1x8x8xf32>
    %84 = arith.mulf %79, %83 : vector<1x8x8xf32>
    %85 = arith.truncf %84 : vector<1x8x8xf32> to vector<1x8x8xbf16>
    "tpu.trace_start"() <{level = 10 : i32, message = "bqk,bkd->bqd"}> : () -> ()
    %cst_36 = arith.constant dense<0.000000e+00> : vector<1x8x8xf32>
    %86 = tpu.matmul %85, %73, %cst_36 {dimension_numbers = #tpu.dot_dimension_numbers<[2], [1], [1], [2], [0, 0, 0, 1, 1, 2], [0], [0]>} : vector<1x8x8xbf16>, vector<1x8x8xbf16>, vector<1x8x8xf32> -> vector<1x8x8xf32>
    "tpu.trace_stop"() : () -> ()
    %87 = vector.shape_cast %86 : vector<1x8x8xf32> to vector<8x8xf32>
    %88 = arith.truncf %87 : vector<8x8xf32> to vector<8x8xbf16>
    %c0_37 = arith.constant 0 : index
    %c16_38 = arith.constant 16 : index
    %89 = vector.load %arg14[%c0_37, %c16_38] : memref<8x32xbf16, #tpu.memory_space<vmem>>, vector<8x8xbf16>
    tpu.vector_store %arg14[%c0_37, %c16_38], %88 {strides = array<i32>} : memref<8x32xbf16, #tpu.memory_space<vmem>>, vector<8x8xbf16>,
    %c0_39 = arith.constant 0 : index
    %c24 = arith.constant 24 : index
    %90 = vector.load %arg13[%c0_39, %c24] : memref<8x96xf32, #tpu.memory_space<vmem>>, vector<8x8xf32>
    %cst_40 = arith.constant 0.353553385 : f32
    %91 = vector.broadcast %cst_40 : f32 to vector<8x8xf32>
    %92 = arith.mulf %90, %91 : vector<8x8xf32>
    %93 = arith.truncf %92 : vector<8x8xf32> to vector<8x8xbf16>
    %94 = vector.shape_cast %93 : vector<8x8xbf16> to vector<1x8x8xbf16>
    %c0_41 = arith.constant 0 : index
    %c56 = arith.constant 56 : index
    %95 = vector.load %arg13[%c0_41, %c56] : memref<8x96xf32, #tpu.memory_space<vmem>>, vector<8x8xf32>
    %96 = arith.truncf %95 : vector<8x8xf32> to vector<8x8xbf16>
    %97 = vector.shape_cast %96 : vector<8x8xbf16> to vector<1x8x8xbf16>
    %c0_42 = arith.constant 0 : index
    %c88 = arith.constant 88 : index
    %98 = vector.load %arg13[%c0_42, %c88] : memref<8x96xf32, #tpu.memory_space<vmem>>, vector<8x8xf32>
    %99 = arith.truncf %98 : vector<8x8xf32> to vector<8x8xbf16>
    %100 = vector.shape_cast %99 : vector<8x8xbf16> to vector<1x8x8xbf16>
    "tpu.trace_start"() <{level = 10 : i32, message = "bqd,bkd->bqk"}> : () -> ()
    %cst_43 = arith.constant dense<0.000000e+00> : vector<1x8x8xf32>
    %101 = tpu.matmul %94, %97, %cst_43 {dimension_numbers = #tpu.dot_dimension_numbers<[2], [2], [1], [1], [0, 0, 0, 1, 1, 1], [0], [0]>} : vector<1x8x8xbf16>, vector<1x8x8xbf16>, vector<1x8x8xf32> -> vector<1x8x8xf32>
    "tpu.trace_stop"() : () -> ()
    %cst_44 = arith.constant dense<0xFF800000> : vector<1x8xf32>
    %102 = vector.multi_reduction <maximumf>, %101, %cst_44 [2] : vector<1x8x8xf32> to vector<1x8xf32>
    %103 = vector.shape_cast %102 : vector<1x8xf32> to vector<1x8x1xf32>
    %104 = vector.broadcast %103 : vector<1x8x1xf32> to vector<1x8x8xf32>
    %105 = arith.subf %101, %104 : vector<1x8x8xf32>
    %106 = math.exp %105 : vector<1x8x8xf32>
    %cst_45 = arith.constant dense<0.000000e+00> : vector<1x8xf32>
    %107 = vector.multi_reduction <add>, %106, %cst_45 [2] : vector<1x8x8xf32> to vector<1x8xf32>
    %108 = vector.shape_cast %107 : vector<1x8xf32> to vector<1x8x1xf32>
    %109 = tpu.reciprocal %108 {approx = true} : vector<1x8x1xf32> -> vector<1x8x1xf32>
    %110 = vector.broadcast %109 : vector<1x8x1xf32> to vector<1x8x8xf32>
    %111 = arith.mulf %106, %110 : vector<1x8x8xf32>
    %112 = arith.truncf %111 : vector<1x8x8xf32> to vector<1x8x8xbf16>
    "tpu.trace_start"() <{level = 10 : i32, message = "bqk,bkd->bqd"}> : () -> ()
    %cst_46 = arith.constant dense<0.000000e+00> : vector<1x8x8xf32>
    %113 = tpu.matmul %112, %100, %cst_46 {dimension_numbers = #tpu.dot_dimension_numbers<[2], [1], [1], [2], [0, 0, 0, 1, 1, 2], [0], [0]>} : vector<1x8x8xbf16>, vector<1x8x8xbf16>, vector<1x8x8xf32> -> vector<1x8x8xf32>
    "tpu.trace_stop"() : () -> ()
    %114 = vector.shape_cast %113 : vector<1x8x8xf32> to vector<8x8xf32>
    %115 = arith.truncf %114 : vector<8x8xf32> to vector<8x8xbf16>
    %c0_47 = arith.constant 0 : index
    %c24_48 = arith.constant 24 : index
    %116 = vector.load %arg14[%c0_47, %c24_48] : memref<8x32xbf16, #tpu.memory_space<vmem>>, vector<8x8xbf16>
    tpu.vector_store %arg14[%c0_47, %c24_48], %115 {strides = array<i32>} : memref<8x32xbf16, #tpu.memory_space<vmem>>, vector<8x8xbf16>,
    %c0_49 = arith.constant 0 : index
    %c0_50 = arith.constant 0 : index
    %117 = vector.load %arg14[%c0_49, %c0_50] : memref<8x32xbf16, #tpu.memory_space<vmem>>, vector<8x32xbf16>
    %c0_51 = arith.constant 0 : index
    %c0_52 = arith.constant 0 : index
    %118 = vector.load %arg4[%c0_51, %c0_52] : memref<32x32xbf16, #tpu.memory_space<vmem>>, vector<32x32xbf16>
    %cst_53 = arith.constant dense<0.000000e+00> : vector<8x32xf32>
    %119 = tpu.matmul %117, %118, %cst_53 {dimension_numbers = #tpu.dot_dimension_numbers<[1], [0], [0], [1], [0, 0, 1, 1], [], []>} : vector<8x32xbf16>, vector<32x32xbf16>, vector<8x32xf32> -> vector<8x32xf32>
    %c0_54 = arith.constant 0 : index
    %c0_55 = arith.constant 0 : index
    %120 = vector.load %arg5[%c0_54, %c0_55] : memref<1x32xf32, #tpu.memory_space<vmem>>, vector<1x32xf32>
    %121 = vector.broadcast %120 : vector<1x32xf32> to vector<8x32xf32>
    %122 = arith.addf %119, %121 : vector<8x32xf32>
    %123 = arith.addf %1, %122 : vector<8x32xf32>
    %cst_56 = arith.constant dense<0.000000e+00> : vector<8xf32>
    %124 = vector.multi_reduction <add>, %123, %cst_56 [1] : vector<8x32xf32> to vector<8xf32>
    %125 = vector.shape_cast %124 : vector<8xf32> to vector<8x1xf32>
    %cst_57 = arith.constant 3.200000e+01 : f32
    %126 = vector.broadcast %cst_57 : f32 to vector<8x1xf32>
    %127 = arith.divf %125, %126 : vector<8x1xf32>
    %128 = vector.broadcast %127 : vector<8x1xf32> to vector<8x32xf32>
    %129 = arith.subf %123, %128 : vector<8x32xf32>
    %130 = vector.broadcast %127 : vector<8x1xf32> to vector<8x32xf32>
    %131 = arith.subf %123, %130 : vector<8x32xf32>
    %132 = arith.mulf %129, %131 : vector<8x32xf32>
    %cst_58 = arith.constant dense<0.000000e+00> : vector<8xf32>
    %133 = vector.multi_reduction <add>, %132, %cst_58 [1] : vector<8x32xf32> to vector<8xf32>
    %134 = vector.shape_cast %133 : vector<8xf32> to vector<8x1xf32>
    %cst_59 = arith.constant 3.200000e+01 : f32
    %135 = vector.broadcast %cst_59 : f32 to vector<8x1xf32>
    %136 = arith.divf %134, %135 : vector<8x1xf32>
    %137 = vector.broadcast %127 : vector<8x1xf32> to vector<8x32xf32>
    %138 = arith.subf %123, %137 : vector<8x32xf32>
    %cst_60 = arith.constant 9.99999974E-6 : f32
    %139 = vector.broadcast %cst_60 : f32 to vector<8x1xf32>
    %140 = arith.addf %136, %139 : vector<8x1xf32>
    %141 = math.rsqrt %140 : vector<8x1xf32>
    %142 = vector.broadcast %141 : vector<8x1xf32> to vector<8x32xf32>
    %143 = arith.mulf %138, %142 : vector<8x32xf32>
    %c0_61 = arith.constant 0 : index
    %c0_62 = arith.constant 0 : index
    %144 = vector.load %arg6[%c0_61, %c0_62] : memref<1x32xf32, #tpu.memory_space<vmem>>, vector<1x32xf32>
    %145 = vector.broadcast %144 : vector<1x32xf32> to vector<8x32xf32>
    %146 = arith.mulf %143, %145 : vector<8x32xf32>
    %c0_63 = arith.constant 0 : index
    %c0_64 = arith.constant 0 : index
    %147 = vector.load %arg7[%c0_63, %c0_64] : memref<1x32xf32, #tpu.memory_space<vmem>>, vector<1x32xf32>
    %148 = vector.broadcast %147 : vector<1x32xf32> to vector<8x32xf32>
    %149 = arith.addf %146, %148 : vector<8x32xf32>
    %150 = vector.shape_cast %149 : vector<8x32xf32> to vector<1x8x32xf32>
    %c0_65 = arith.constant 0 : index
    %c0_66 = arith.constant 0 : index
    %c0_67 = arith.constant 0 : index
    %151 = vector.load %arg10[%c0_65, %c0_66, %c0_67] : memref<1x8x32xf32, #tpu.memory_space<vmem>>, vector<1x8x32xf32>
    tpu.vector_store %arg10[%c0_65, %c0_66, %c0_67], %150 {strides = array<i32>} : memref<1x8x32xf32, #tpu.memory_space<vmem>>, vector<1x8x32xf32>,
    %152 = arith.truncf %149 : vector<8x32xf32> to vector<8x32xbf16>
    %c0_68 = arith.constant 0 : index
    %c0_69 = arith.constant 0 : index
    %153 = vector.load %arg8[%c0_68, %c0_69] : memref<32x4xbf16, #tpu.memory_space<vmem>>, vector<32x4xbf16>
    %cst_70 = arith.constant dense<0.000000e+00> : vector<8x4xf32>
    %154 = tpu.matmul %152, %153, %cst_70 {dimension_numbers = #tpu.dot_dimension_numbers<[1], [0], [0], [1], [0, 0, 1, 1], [], []>} : vector<8x32xbf16>, vector<32x4xbf16>, vector<8x4xf32> -> vector<8x4xf32>
    %c0_71 = arith.constant 0 : index
    %c0_72 = arith.constant 0 : index
    %155 = vector.load %arg9[%c0_71, %c0_72] : memref<1x4xf32, #tpu.memory_space<vmem>>, vector<1x4xf32>
    %156 = vector.broadcast %155 : vector<1x4xf32> to vector<8x4xf32>
    %157 = arith.addf %154, %156 : vector<8x4xf32>
    %cst_73 = arith.constant dense<0xFF800000> : vector<8xf32>
    %158 = vector.multi_reduction <maximumf>, %157, %cst_73 [1] : vector<8x4xf32> to vector<8xf32>
    %159 = vector.shape_cast %158 : vector<8xf32> to vector<8x1xf32>
    %160 = vector.broadcast %159 : vector<8x1xf32> to vector<8x4xf32>
    %161 = arith.subf %157, %160 : vector<8x4xf32>
    %162 = math.exp %161 : vector<8x4xf32>
    %cst_74 = arith.constant dense<0.000000e+00> : vector<8xf32>
    %163 = vector.multi_reduction <add>, %162, %cst_74 [1] : vector<8x4xf32> to vector<8xf32>
    %164 = vector.shape_cast %163 : vector<8xf32> to vector<8x1xf32>
    %165 = vector.broadcast %164 : vector<8x1xf32> to vector<8x4xf32>
    %166 = arith.divf %162, %165 : vector<8x4xf32>
    %167 = tpu.iota {dimensions = array<i32: 1>} : vector<8x4xi32>
    %cst_75 = arith.constant 0.000000e+00 : f32
    %168 = vector.broadcast %cst_75 : f32 to vector<8x4xf32>
    %cst_76 = arith.constant dense<0xFF800000> : vector<8xf32>
    %169 = vector.multi_reduction <maximumf>, %166, %cst_76 [1] : vector<8x4xf32> to vector<8xf32>
    %170 = vector.shape_cast %169 : vector<8xf32> to vector<8x1xf32>
    %171 = vector.broadcast %170 : vector<8x1xf32> to vector<8x4xf32>
    %172 = arith.cmpf oeq, %166, %171 : vector<8x4xf32>
    %c4_i32 = arith.constant 4 : i32
    %173 = vector.broadcast %c4_i32 : i32 to vector<8x4xi32>
    %174 = arith.select %172, %167, %173 : vector<8x4xi1>, vector<8x4xi32>
    %cst_77 = arith.constant dense<2147483647> : vector<8xi32>
    %175 = vector.multi_reduction <minsi>, %174, %cst_77 [1] : vector<8x4xi32> to vector<8xi32>
    %176 = vector.shape_cast %175 : vector<8xi32> to vector<8x1xi32>
    %177 = vector.broadcast %176 : vector<8x1xi32> to vector<8x4xi32>
    %178 = arith.cmpi eq, %167, %177 : vector<8x4xi32>
    %179 = arith.extui %178 : vector<8x4xi1> to vector<8x4xi32>
    %180 = arith.sitofp %179 : vector<8x4xi32> to vector<8x4xf32>
    %181 = arith.addf %168, %180 : vector<8x4xf32>
    %cst_78 = arith.constant 0.000000e+00 : f32
    %182 = vector.broadcast %cst_78 : f32 to vector<8x4xf32>
    %183 = arith.cmpf ogt, %180, %182 : vector<8x4xf32>
    %cst_79 = arith.constant 0xFF800000 : f32
    %184 = vector.broadcast %cst_79 : f32 to vector<8x4xf32>
    %185 = arith.select %183, %184, %166 : vector<8x4xi1>, vector<8x4xf32>
    %cst_80 = arith.constant dense<0xFF800000> : vector<8xf32>
    %186 = vector.multi_reduction <maximumf>, %185, %cst_80 [1] : vector<8x4xf32> to vector<8xf32>
    %187 = vector.shape_cast %186 : vector<8xf32> to vector<8x1xf32>
    %188 = vector.broadcast %187 : vector<8x1xf32> to vector<8x4xf32>
    %189 = arith.cmpf oeq, %185, %188 : vector<8x4xf32>
    %c4_i32_81 = arith.constant 4 : i32
    %190 = vector.broadcast %c4_i32_81 : i32 to vector<8x4xi32>
    %191 = arith.select %189, %167, %190 : vector<8x4xi1>, vector<8x4xi32>
    %cst_82 = arith.constant dense<2147483647> : vector<8xi32>
    %192 = vector.multi_reduction <minsi>, %191, %cst_82 [1] : vector<8x4xi32> to vector<8xi32>
    %193 = vector.shape_cast %192 : vector<8xi32> to vector<8x1xi32>
    %194 = vector.broadcast %193 : vector<8x1xi32> to vector<8x4xi32>
    %195 = arith.cmpi eq, %167, %194 : vector<8x4xi32>
    %196 = arith.extui %195 : vector<8x4xi1> to vector<8x4xi32>
    %197 = arith.sitofp %196 : vector<8x4xi32> to vector<8x4xf32>
    %198 = arith.addf %181, %197 : vector<8x4xf32>
    %199 = arith.mulf %166, %198 : vector<8x4xf32>
    %cst_83 = arith.constant dense<0.000000e+00> : vector<8xf32>
    %200 = vector.multi_reduction <add>, %199, %cst_83 [1] : vector<8x4xf32> to vector<8xf32>
    %201 = vector.shape_cast %200 : vector<8xf32> to vector<8x1xf32>
    %202 = vector.broadcast %201 : vector<8x1xf32> to vector<8x4xf32>
    %203 = arith.divf %199, %202 : vector<8x4xf32>
    %204 = vector.shape_cast %203 : vector<8x4xf32> to vector<1x8x4xf32>
    %c0_84 = arith.constant 0 : index
    %c0_85 = arith.constant 0 : index
    %c0_86 = arith.constant 0 : index
    %205 = vector.load %arg11[%c0_84, %c0_85, %c0_86] : memref<1x8x4xf32, #tpu.memory_space<vmem>>, vector<1x8x4xf32>
    tpu.vector_store %arg11[%c0_84, %c0_85, %c0_86], %204 {strides = array<i32>} : memref<1x8x4xf32, #tpu.memory_space<vmem>>, vector<1x8x4xf32>,
    %206 = vector.shape_cast %198 : vector<8x4xf32> to vector<1x8x4xf32>
    %207 = vector.shape_cast %166 : vector<8x4xf32> to vector<1x8x4xf32>
    %cst_87 = arith.constant dense<0.000000e+00> : vector<1x4xf32>
    %208 = vector.multi_reduction <add>, %206, %cst_87 [1] : vector<1x8x4xf32> to vector<1x4xf32>
    %209 = vector.shape_cast %208 : vector<1x4xf32> to vector<1x1x4xf32>
    %cst_88 = arith.constant dense<0.000000e+00> : vector<1x4xf32>
    %210 = vector.multi_reduction <add>, %207, %cst_88 [1] : vector<1x8x4xf32> to vector<1x4xf32>
    %211 = vector.shape_cast %210 : vector<1x4xf32> to vector<1x1x4xf32>
    %212 = tpu.concatenate %209, %211 in 1 : vector<1x1x4xf32>, vector<1x1x4xf32> -> vector<1x2x4xf32>
    %c0_89 = arith.constant 0 : index
    %c0_90 = arith.constant 0 : index
    %c0_91 = arith.constant 0 : index
    %213 = vector.load %arg12[%c0_89, %c0_90, %c0_91] : memref<1x2x4xf32, #tpu.memory_space<vmem>>, vector<1x2x4xf32>
    tpu.vector_store %arg12[%c0_89, %c0_90, %c0_91], %212 {strides = array<i32>} : memref<1x2x4xf32, #tpu.memory_space<vmem>>, vector<1x2x4xf32>,
    return
  }
  func.func @transform_0(%arg0: i32) -> (i32, i32, i32) {
    %c0_i32 = arith.constant 0 : i32
    %c0_i32_0 = arith.constant 0 : i32
    %c0_i32_1 = arith.constant 0 : i32
    return %arg0, %c0_i32, %c0_i32_0 : i32, i32, i32
  }
  func.func @transform_1(%arg0: i32) -> (i32, i32) {
    %c0_i32 = arith.constant 0 : i32
    %c0_i32_0 = arith.constant 0 : i32
    %c0_i32_1 = arith.constant 0 : i32
    return %c0_i32, %c0_i32_0 : i32, i32
  }
  func.func @transform_2(%arg0: i32) -> (i32, i32) {
    %c0_i32 = arith.constant 0 : i32
    %c0_i32_0 = arith.constant 0 : i32
    %c0_i32_1 = arith.constant 0 : i32
    return %c0_i32, %c0_i32_0 : i32, i32
  }
  func.func @transform_3(%arg0: i32) -> (i32, i32) {
    %c0_i32 = arith.constant 0 : i32
    %c0_i32_0 = arith.constant 0 : i32
    %c0_i32_1 = arith.constant 0 : i32
    return %c0_i32, %c0_i32_0 : i32, i32
  }
  func.func @transform_4(%arg0: i32) -> (i32, i32) {
    %c0_i32 = arith.constant 0 : i32
    %c0_i32_0 = arith.constant 0 : i32
    %c0_i32_1 = arith.constant 0 : i32
    return %c0_i32, %c0_i32_0 : i32, i32
  }
  func.func @transform_5(%arg0: i32) -> (i32, i32) {
    %c0_i32 = arith.constant 0 : i32
    %c0_i32_0 = arith.constant 0 : i32
    %c0_i32_1 = arith.constant 0 : i32
    return %c0_i32, %c0_i32_0 : i32, i32
  }
  func.func @transform_6(%arg0: i32) -> (i32, i32) {
    %c0_i32 = arith.constant 0 : i32
    %c0_i32_0 = arith.constant 0 : i32
    %c0_i32_1 = arith.constant 0 : i32
    return %c0_i32, %c0_i32_0 : i32, i32
  }
  func.func @transform_7(%arg0: i32) -> (i32, i32) {
    %c0_i32 = arith.constant 0 : i32
    %c0_i32_0 = arith.constant 0 : i32
    %c0_i32_1 = arith.constant 0 : i32
    return %c0_i32, %c0_i32_0 : i32, i32
  }
  func.func @transform_8(%arg0: i32) -> (i32, i32) {
    %c0_i32 = arith.constant 0 : i32
    %c0_i32_0 = arith.constant 0 : i32
    %c0_i32_1 = arith.constant 0 : i32
    return %c0_i32, %c0_i32_0 : i32, i32
  }
  func.func @transform_9(%arg0: i32) -> (i32, i32, i32) {
    %c0_i32 = arith.constant 0 : i32
    %c0_i32_0 = arith.constant 0 : i32
    %c0_i32_1 = arith.constant 0 : i32
    return %arg0, %c0_i32, %c0_i32_0 : i32, i32, i32
  }
  func.func @transform_10(%arg0: i32) -> (i32, i32, i32) {
    %c0_i32 = arith.constant 0 : i32
    %c0_i32_0 = arith.constant 0 : i32
    %c0_i32_1 = arith.constant 0 : i32
    return %arg0, %c0_i32, %c0_i32_0 : i32, i32, i32
  }
  func.func @transform_11(%arg0: i32) -> (i32, i32, i32) {
    %c0_i32 = arith.constant 0 : i32
    %c0_i32_0 = arith.constant 0 : i32
    %c0_i32_1 = arith.constant 0 : i32
    return %arg0, %c0_i32, %c0_i32_0 : i32, i32, i32
  }
}

module attributes {stable_mosaic.version = 11 : i64} {
  func.func @_moe_ln_kernel(%arg0: i32, %arg1: i32, %arg2: memref<16x32xf32, #tpu.memory_space<vmem>>, %arg3: memref<1x16x1xf32, #tpu.memory_space<vmem>>, %arg4: memref<1x32x128xbf16, #tpu.memory_space<vmem>>, %arg5: memref<1x1x128xf32, #tpu.memory_space<vmem>>, %arg6: memref<1x128x32xbf16, #tpu.memory_space<vmem>>, %arg7: memref<1x1x32xf32, #tpu.memory_space<vmem>>, %arg8: memref<1x32xf32, #tpu.memory_space<vmem>>, %arg9: memref<1x32xf32, #tpu.memory_space<vmem>>, %arg10: memref<16x32xf32, #tpu.memory_space<vmem>>, %arg11: memref<16x32xf32, #tpu.memory_space<vmem>>) attributes {dimension_semantics = [#tpu.dimension_semantics<parallel>, #tpu.dimension_semantics<arbitrary>], iteration_bounds = array<i64: 1, 4>, scalar_prefetch = 0 : i64, scratch_operands = 1 : i64, tpu.core_type = #tpu.core_type<tc>, window_params = [{transform_indices = @transform_0, window_bounds = array<i64: 16, 32>}, {transform_indices = @transform_1, window_bounds = array<i64: 1, 16, 1>}, {transform_indices = @transform_2, window_bounds = array<i64: 1, 32, 128>}, {transform_indices = @transform_3, window_bounds = array<i64: 1, 1, 128>}, {transform_indices = @transform_4, window_bounds = array<i64: 1, 128, 32>}, {transform_indices = @transform_5, window_bounds = array<i64: 1, 1, 32>}, {pipeline_mode = #tpu.pipeline_mode<synchronous>, transform_indices = @transform_6, window_bounds = array<i64: 1, 32>}, {pipeline_mode = #tpu.pipeline_mode<synchronous>, transform_indices = @transform_7, window_bounds = array<i64: 1, 32>}, {transform_indices = @transform_8, window_bounds = array<i64: 16, 32>}]} {
    %c0_i32 = arith.constant 0 : i32
    %0 = arith.cmpi eq, %arg1, %c0_i32 : i32
    %1 = arith.extui %0 : i1 to i32
    %c0_i32_0 = arith.constant 0 : i32
    %2 = arith.cmpi ne, %1, %c0_i32_0 : i32
    scf.if %2 {
      %cst_24 = arith.constant 0.000000e+00 : f32
      %32 = vector.broadcast %cst_24 : f32 to vector<16x32xf32>
      %c0_25 = arith.constant 0 : index
      %c0_26 = arith.constant 0 : index
      %33 = vector.load %arg11[%c0_25, %c0_26] : memref<16x32xf32, #tpu.memory_space<vmem>>, vector<16x32xf32>
      tpu.vector_store %arg11[%c0_25, %c0_26], %32 {strides = array<i32>} : memref<16x32xf32, #tpu.memory_space<vmem>>, vector<16x32xf32>,
    } else {
    }
    %c0 = arith.constant 0 : index
    %c0_1 = arith.constant 0 : index
    %3 = vector.load %arg2[%c0, %c0_1] : memref<16x32xf32, #tpu.memory_space<vmem>>, vector<16x32xf32>
    %4 = arith.truncf %3 : vector<16x32xf32> to vector<16x32xbf16>
    %c0_2 = arith.constant 0 : index
    %c0_3 = arith.constant 0 : index
    %c0_4 = arith.constant 0 : index
    %5 = vector.load %arg3[%c0_2, %c0_3, %c0_4] : memref<1x16x1xf32, #tpu.memory_space<vmem>>, vector<1x16x1xf32>
    %6 = vector.shape_cast %5 : vector<1x16x1xf32> to vector<16x1xf32>
    %c0_5 = arith.constant 0 : index
    %c0_6 = arith.constant 0 : index
    %c0_7 = arith.constant 0 : index
    %7 = vector.load %arg4[%c0_5, %c0_6, %c0_7] : memref<1x32x128xbf16, #tpu.memory_space<vmem>>, vector<1x32x128xbf16>
    %8 = vector.shape_cast %7 : vector<1x32x128xbf16> to vector<32x128xbf16>
    %cst = arith.constant dense<0.000000e+00> : vector<16x128xf32>
    %9 = tpu.matmul %4, %8, %cst {dimension_numbers = #tpu.dot_dimension_numbers<[1], [0], [0], [1], [0, 0, 1, 1], [], []>} : vector<16x32xbf16>, vector<32x128xbf16>, vector<16x128xf32> -> vector<16x128xf32>
    %c0_8 = arith.constant 0 : index
    %c0_9 = arith.constant 0 : index
    %c0_10 = arith.constant 0 : index
    %10 = vector.load %arg5[%c0_8, %c0_9, %c0_10] : memref<1x1x128xf32, #tpu.memory_space<vmem>>, vector<1x1x128xf32>
    %11 = vector.shape_cast %10 : vector<1x1x128xf32> to vector<1x128xf32>
    %12 = vector.broadcast %11 : vector<1x128xf32> to vector<16x128xf32>
    %13 = arith.addf %9, %12 : vector<16x128xf32>
    %cst_11 = arith.constant 0.000000e+00 : f32
    %14 = vector.broadcast %cst_11 : f32 to vector<16x128xf32>
    %15 = arith.maximumf %13, %14 : vector<16x128xf32>
    %16 = arith.truncf %15 : vector<16x128xf32> to vector<16x128xbf16>
    %c0_12 = arith.constant 0 : index
    %c0_13 = arith.constant 0 : index
    %c0_14 = arith.constant 0 : index
    %17 = vector.load %arg6[%c0_12, %c0_13, %c0_14] : memref<1x128x32xbf16, #tpu.memory_space<vmem>>, vector<1x128x32xbf16>
    %18 = vector.shape_cast %17 : vector<1x128x32xbf16> to vector<128x32xbf16>
    %cst_15 = arith.constant dense<0.000000e+00> : vector<16x32xf32>
    %19 = tpu.matmul %16, %18, %cst_15 {dimension_numbers = #tpu.dot_dimension_numbers<[1], [0], [0], [1], [0, 0, 1, 1], [], []>} : vector<16x128xbf16>, vector<128x32xbf16>, vector<16x32xf32> -> vector<16x32xf32>
    %c0_16 = arith.constant 0 : index
    %c0_17 = arith.constant 0 : index
    %c0_18 = arith.constant 0 : index
    %20 = vector.load %arg7[%c0_16, %c0_17, %c0_18] : memref<1x1x32xf32, #tpu.memory_space<vmem>>, vector<1x1x32xf32>
    %21 = vector.shape_cast %20 : vector<1x1x32xf32> to vector<1x32xf32>
    %22 = vector.broadcast %21 : vector<1x32xf32> to vector<16x32xf32>
    %23 = arith.addf %19, %22 : vector<16x32xf32>
    %c0_19 = arith.constant 0 : index
    %c0_20 = arith.constant 0 : index
    %24 = vector.load %arg11[%c0_19, %c0_20] : memref<16x32xf32, #tpu.memory_space<vmem>>, vector<16x32xf32>
    %25 = vector.broadcast %6 : vector<16x1xf32> to vector<16x32xf32>
    %26 = arith.mulf %25, %23 : vector<16x32xf32>
    %27 = arith.addf %24, %26 : vector<16x32xf32>
    %c0_21 = arith.constant 0 : index
    %c0_22 = arith.constant 0 : index
    %28 = vector.load %arg11[%c0_21, %c0_22] : memref<16x32xf32, #tpu.memory_space<vmem>>, vector<16x32xf32>
    tpu.vector_store %arg11[%c0_21, %c0_22], %27 {strides = array<i32>} : memref<16x32xf32, #tpu.memory_space<vmem>>, vector<16x32xf32>,
    %c3_i32 = arith.constant 3 : i32
    %29 = arith.cmpi eq, %arg1, %c3_i32 : i32
    %30 = arith.extui %29 : i1 to i32
    %c0_i32_23 = arith.constant 0 : i32
    %31 = arith.cmpi ne, %30, %c0_i32_23 : i32
    scf.if %31 {
      %c0_24 = arith.constant 0 : index
      %c0_25 = arith.constant 0 : index
      %32 = vector.load %arg11[%c0_24, %c0_25] : memref<16x32xf32, #tpu.memory_space<vmem>>, vector<16x32xf32>
      %33 = arith.addf %3, %32 : vector<16x32xf32>
      %cst_26 = arith.constant dense<0.000000e+00> : vector<16xf32>
      %34 = vector.multi_reduction <add>, %33, %cst_26 [1] : vector<16x32xf32> to vector<16xf32>
      %35 = vector.shape_cast %34 : vector<16xf32> to vector<16x1xf32>
      %cst_27 = arith.constant 3.200000e+01 : f32
      %36 = vector.broadcast %cst_27 : f32 to vector<16x1xf32>
      %37 = arith.divf %35, %36 : vector<16x1xf32>
      %38 = vector.broadcast %37 : vector<16x1xf32> to vector<16x32xf32>
      %39 = arith.subf %33, %38 : vector<16x32xf32>
      %40 = vector.broadcast %37 : vector<16x1xf32> to vector<16x32xf32>
      %41 = arith.subf %33, %40 : vector<16x32xf32>
      %42 = arith.mulf %39, %41 : vector<16x32xf32>
      %cst_28 = arith.constant dense<0.000000e+00> : vector<16xf32>
      %43 = vector.multi_reduction <add>, %42, %cst_28 [1] : vector<16x32xf32> to vector<16xf32>
      %44 = vector.shape_cast %43 : vector<16xf32> to vector<16x1xf32>
      %cst_29 = arith.constant 3.200000e+01 : f32
      %45 = vector.broadcast %cst_29 : f32 to vector<16x1xf32>
      %46 = arith.divf %44, %45 : vector<16x1xf32>
      %47 = vector.broadcast %37 : vector<16x1xf32> to vector<16x32xf32>
      %48 = arith.subf %33, %47 : vector<16x32xf32>
      %cst_30 = arith.constant 9.99999974E-6 : f32
      %49 = vector.broadcast %cst_30 : f32 to vector<16x1xf32>
      %50 = arith.addf %46, %49 : vector<16x1xf32>
      %51 = math.rsqrt %50 : vector<16x1xf32>
      %52 = vector.broadcast %51 : vector<16x1xf32> to vector<16x32xf32>
      %53 = arith.mulf %48, %52 : vector<16x32xf32>
      %c0_31 = arith.constant 0 : index
      %c0_32 = arith.constant 0 : index
      %54 = vector.load %arg8[%c0_31, %c0_32] : memref<1x32xf32, #tpu.memory_space<vmem>>, vector<1x32xf32>
      %55 = vector.broadcast %54 : vector<1x32xf32> to vector<16x32xf32>
      %56 = arith.mulf %53, %55 : vector<16x32xf32>
      %c0_33 = arith.constant 0 : index
      %c0_34 = arith.constant 0 : index
      %57 = vector.load %arg9[%c0_33, %c0_34] : memref<1x32xf32, #tpu.memory_space<vmem>>, vector<1x32xf32>
      %58 = vector.broadcast %57 : vector<1x32xf32> to vector<16x32xf32>
      %59 = arith.addf %56, %58 : vector<16x32xf32>
      %c0_35 = arith.constant 0 : index
      %c0_36 = arith.constant 0 : index
      %60 = vector.load %arg10[%c0_35, %c0_36] : memref<16x32xf32, #tpu.memory_space<vmem>>, vector<16x32xf32>
      tpu.vector_store %arg10[%c0_35, %c0_36], %59 {strides = array<i32>} : memref<16x32xf32, #tpu.memory_space<vmem>>, vector<16x32xf32>,
    } else {
    }
    return
  }
  func.func @transform_0(%arg0: i32, %arg1: i32) -> (i32, i32) {
    %c0_i32 = arith.constant 0 : i32
    %c0_i32_0 = arith.constant 0 : i32
    return %arg0, %c0_i32 : i32, i32
  }
  func.func @transform_1(%arg0: i32, %arg1: i32) -> (i32, i32, i32) {
    %c0_i32 = arith.constant 0 : i32
    %c0_i32_0 = arith.constant 0 : i32
    return %arg1, %arg0, %c0_i32 : i32, i32, i32
  }
  func.func @transform_2(%arg0: i32, %arg1: i32) -> (i32, i32, i32) {
    %c0_i32 = arith.constant 0 : i32
    %c0_i32_0 = arith.constant 0 : i32
    %c0_i32_1 = arith.constant 0 : i32
    return %arg1, %c0_i32, %c0_i32_0 : i32, i32, i32
  }
  func.func @transform_3(%arg0: i32, %arg1: i32) -> (i32, i32, i32) {
    %c0_i32 = arith.constant 0 : i32
    %c0_i32_0 = arith.constant 0 : i32
    %c0_i32_1 = arith.constant 0 : i32
    return %arg1, %c0_i32, %c0_i32_0 : i32, i32, i32
  }
  func.func @transform_4(%arg0: i32, %arg1: i32) -> (i32, i32, i32) {
    %c0_i32 = arith.constant 0 : i32
    %c0_i32_0 = arith.constant 0 : i32
    %c0_i32_1 = arith.constant 0 : i32
    return %arg1, %c0_i32, %c0_i32_0 : i32, i32, i32
  }
  func.func @transform_5(%arg0: i32, %arg1: i32) -> (i32, i32, i32) {
    %c0_i32 = arith.constant 0 : i32
    %c0_i32_0 = arith.constant 0 : i32
    %c0_i32_1 = arith.constant 0 : i32
    return %arg1, %c0_i32, %c0_i32_0 : i32, i32, i32
  }
  func.func @transform_6(%arg0: i32, %arg1: i32) -> (i32, i32) {
    %c0_i32 = arith.constant 0 : i32
    %c0_i32_0 = arith.constant 0 : i32
    %c0_i32_1 = arith.constant 0 : i32
    return %c0_i32, %c0_i32_0 : i32, i32
  }
  func.func @transform_7(%arg0: i32, %arg1: i32) -> (i32, i32) {
    %c0_i32 = arith.constant 0 : i32
    %c0_i32_0 = arith.constant 0 : i32
    %c0_i32_1 = arith.constant 0 : i32
    return %c0_i32, %c0_i32_0 : i32, i32
  }
  func.func @transform_8(%arg0: i32, %arg1: i32) -> (i32, i32) {
    %c0_i32 = arith.constant 0 : i32
    %c0_i32_0 = arith.constant 0 : i32
    return %arg0, %c0_i32 : i32, i32
  }
}

</mosaic_0001>

<bundles_post_ra>
// kernel: encoder_block.2
= control target key start
LH: loop header
LB: loop body
LE: loop exit
PB: predicated region body
PF: predicated region fallthrough
CT: control target
= control target key end

     0   :  { %17 = vsyncpa [#allocation5], 0  ;;  %s2247_s0 = inlined_call_operand.vmem [shape: f32[2,8,32], index: 0, kind: input, shape index: {}]   ;;  %s2248_s1 = inlined_call_operand.vmem [shape: bf16[32,96], index: 1, kind: input, shape index: {}]   ;;  %s2249_s2 = inlined_call_operand.hbm [shape: f32[1,96], index: 2, kind: input, shape index: {}]   ;;  %s2250_s3 = inlined_call_operand.vmem [shape: bf16[32,32], index: 3, kind: input, shape index: {}]   ;;  %s2251_s4 = inlined_call_operand.hbm [shape: f32[1,32], index: 4, kind: input, shape index: {}]   ;;  %s2252_s5 = inlined_call_operand.hbm [shape: f32[1,32], index: 5, kind: input, shape index: {}]   ;;  %s2253_s6 = inlined_call_operand.hbm [shape: f32[1,32], index: 6, kind: input, shape index: {}]   ;;  %s2254_s7 = inlined_call_operand.vmem [shape: bf16[32,4], index: 7, kind: input, shape index: {}]   ;;  %s2255_s8 = inlined_call_operand.hbm [shape: f32[1,4], index: 8, kind: input, shape index: {}]   ;;  %s2256_s9 = inlined_call_operand.vmem [shape: f32[2,8,32], index: 9, kind: output, shape index: {0}]   ;;  %s2257_s10 = inlined_call_operand.vmem [shape: f32[2,8,4], index: 10, kind: output, shape index: {1}]   ;;  %s2258_s11 = inlined_call_operand.vmem [shape: f32[2,2,4], index: 11, kind: output, shape index: {2}]  }
   0x1   :  { %18 = vsyncpa [#allocation7], 0 }
   0x2   :  { %19 = vsyncpa [#allocation10], 0  ;;  %s1945_s17 = smov 0  }
   0x3 LB: > { %s1864_s18 = smov [#allocation6]   ;;  %s1951_s20 = sadd.s32 4294967295, %s1862_s17   ;;  %s1862_s17 = sphi %s1945_s17, %s25_s17  }
   0x4   : > { %s332_s19 = sshll.u32 %s1864_s18, 4  ;;  %p1453_p0 = scmp.ge.s32.totalorder %s1862_s17, 1  ;;  %s1956_s19 = int_to_ptr.vmem [resolvable:$true] %s332_s19 }
   0x5   : > { %p302_p1 = scmp.lt.s32.totalorder %s1862_s17, 3  ;;  %p2259_p2 = scmp.eq.s32.totalorder %s1951_s20, 0 }
   0x6   : > { %s1865_s22 = smov [#allocation9]   ;;  %s1866_s24 = smov [#allocation4]  }
   0x7   : > { %p1958_p3 = pnand %p1453_p0, %p302_p1  ;;  %s354_s23 = sshll.u32 %s1865_s22, 4  ;;  %s1964_s23 = int_to_ptr.vmem [resolvable:$true] %s354_s23 }
   0x8   : > { %s318_s25 = sshll.u32 %s1866_s24, 4  ;;  %s1867_s27 = smov [#allocation8]   ;;  %s1972_s25 = int_to_ptr.vmem [resolvable:$true] %s318_s25 }
   0x9   : > { %s2261_s21 = scalar_select %p1958_p3, 1, 0 }
   0xa   : > { %p1619_p4 = pneg %p1958_p3  ;;  %s343_s28 = sshll.u32 %s1867_s27, 4  ;;  %s1974_s28 = int_to_ptr.vmem [resolvable:$true] %s343_s28 }
   0xb   : > { %s1704_s12 = scalar_lea.hbm %s2251_s4, 16 }
   0xc   : > { %p1968_p5 = pnand %p2259_p2, %p1619_p4  ;;  %p1705_p6 = scmp.ne.s32.totalorder %s2251_s4, %s1704_s12 }
   0xd   : > { %p1711_p10 = scmp.lt.u32.totalorder %s1704_s12, %s2251_s4 }
   0xe   : > { %p1984_p7 = pneg %p1968_p5 }
  0x10   : > { %p1707_p8 = pnand %p1984_p7, %p1705_p6 }
  0x12   : > { %p1708_p9 = pneg %p1707_p8 }
  0x14   : > { %p1713_p11 = pnand %p1711_p10, %p1708_p9 }
  0x16   : > { %1716 = shalt.err (!%p1713_p11)
}
  0x17   : > { %s1717_s22 = scalar_lea.vmem %s1956_s19, 16  ;;  %s1724_s24 = scalar_lea.vmem %s1956_s19, 32 }
  0x18   : > { %p1718_p12 = scmp.ne.s32.totalorder %s1956_s19, %s1717_s22  ;;  %p1725_p1 = scmp.lt.s32.totalorder %s1956_s19, %s1956_s19 }
  0x19   : > { %p1726_p4 = scmp.lt.s32.totalorder %s1724_s24, %s1717_s22 }
  0x1a   : > { %p1720_p13 = pnand %p1718_p12, %p1984_p7 }
  0x1b   : > { %p1727_p6 = por %p1726_p4, %p1725_p1 }
  0x1c   : > { %p1721_p0 = pneg %p1720_p13 }
  0x1e   : > { %p1728_p8 = pnand %p1727_p6, %p1721_p0 }
  0x20   : > { %1731 = shalt.err (!%p1728_p8)
}
  0x21   : > { %1625 = dma.hbm_to_vmem [thread:$0]  (!%p1968_p5), %s2251_s4, 16, %s1956_s19, [#allocation7]  }
  0x22   : > { %s1732_s13 = scalar_lea.hbm %s2253_s6, 16 }
  0x23   : > { %p1733_p9 = scmp.ne.s32.totalorder %s2253_s6, %s1732_s13  ;;  %p1739_p12 = scmp.lt.u32.totalorder %s1732_s13, %s2253_s6 }
  0x25   : > { %p1735_p10 = pnand %p1733_p9, %p1984_p7 }
  0x27   : > { %p1736_p11 = pneg %p1735_p10 }
  0x29   : > { %p1741_p13 = pnand %p1739_p12, %p1736_p11 }
  0x2b   : > { %1744 = shalt.err (!%p1741_p13)
}
  0x2c   : > { %s1745_s19 = scalar_lea.vmem %s1964_s23, 16  ;;  %s1752_s24 = scalar_lea.vmem %s1964_s23, 32 }
  0x2d   : > { %p1746_p0 = scmp.ne.s32.totalorder %s1964_s23, %s1745_s19  ;;  %p1753_p6 = scmp.lt.s32.totalorder %s1964_s23, %s1964_s23 }
  0x2e   : > { %p1754_p8 = scmp.lt.s32.totalorder %s1752_s24, %s1745_s19 }
  0x2f   : > { %p1748_p1 = pnand %p1746_p0, %p1984_p7 }
  0x30   : > { %p1755_p9 = por %p1754_p8, %p1753_p6 }
  0x31   : > { %p1749_p4 = pneg %p1748_p1 }
  0x33   : > { %p1756_p10 = pnand %p1755_p9, %p1749_p4 }
  0x35   : > { %1759 = shalt.err (!%p1756_p10)
}
  0x36   : > { %1631 = dma.hbm_to_vmem [thread:$0]  (!%p1968_p5), %s2253_s6, 16, %s1964_s23, [#allocation10]  }
  0x37   : > { %s1760_s13 = scalar_lea.hbm %s2249_s2, 16 }
  0x38   : > { %p1761_p11 = scmp.ne.s32.totalorder %s2249_s2, %s1760_s13  ;;  %p1767_p0 = scmp.lt.u32.totalorder %s1760_s13, %s2249_s2 }
  0x3a   : > { %p1763_p12 = pnand %p1761_p11, %p1984_p7 }
  0x3c   : > { %p1764_p13 = pneg %p1763_p12 }
  0x3e   : > { %p1769_p1 = pnand %p1767_p0, %p1764_p13 }
  0x40   : > { %1772 = shalt.err (!%p1769_p1)
}
  0x41   : > { %s1773_s23 = scalar_lea.vmem %s1972_s25, 16  ;;  %s1780_s19 = scalar_lea.vmem %s1972_s25, 32 }
  0x42   : > { %p1774_p4 = scmp.ne.s32.totalorder %s1972_s25, %s1773_s23  ;;  %p1781_p9 = scmp.lt.s32.totalorder %s1972_s25, %s1972_s25 }
  0x43   : > { %p1782_p10 = scmp.lt.s32.totalorder %s1780_s19, %s1773_s23 }
  0x44   : > { %p1776_p6 = pnand %p1774_p4, %p1984_p7 }
  0x45   : > { %p1783_p11 = por %p1782_p10, %p1781_p9 }
  0x46   : > { %p1777_p8 = pneg %p1776_p6 }
  0x48   : > { %p1784_p12 = pnand %p1783_p11, %p1777_p8 }
  0x4a   : > { %1787 = shalt.err (!%p1784_p12)
}
  0x4b   : > { %1622 = dma.hbm_to_vmem [thread:$0]  (!%p1968_p5), %s2249_s2, 16, %s1972_s25, [#allocation5]  }
  0x4c   : > { %s1788_s12 = scalar_lea.hbm %s2252_s5, 16 }
  0x4d   : > { %p1789_p13 = scmp.ne.s32.totalorder %s2252_s5, %s1788_s12  ;;  %p1795_p4 = scmp.lt.u32.totalorder %s1788_s12, %s2252_s5 }
  0x4f   : > { %p1791_p0 = pnand %p1789_p13, %p1984_p7 }
  0x51   : > { %p1792_p1 = pneg %p1791_p0 }
  0x53   : > { %p1797_p6 = pnand %p1795_p4, %p1792_p1 }
  0x55   : > { %1800 = shalt.err (!%p1797_p6)
}
  0x56   : > { %s1801_s25 = scalar_lea.vmem %s1974_s28, 16  ;;  %s1808_s22 = scalar_lea.vmem %s1974_s28, 32 }
  0x57   : > { %p1802_p8 = scmp.ne.s32.totalorder %s1974_s28, %s1801_s25  ;;  %p1809_p11 = scmp.lt.s32.totalorder %s1974_s28, %s1974_s28 }
  0x58   : > { %p1810_p12 = scmp.lt.s32.totalorder %s1808_s22, %s1801_s25 }
  0x59   : > { %p1804_p9 = pnand %p1802_p8, %p1984_p7 }
  0x5a   : > { %p1811_p13 = por %p1810_p12, %p1809_p11 }
  0x5b   : > { %p1805_p10 = pneg %p1804_p9 }
  0x5d   : > { %p1812_p0 = pnand %p1811_p13, %p1805_p10 }
  0x5f   : > { %1815 = shalt.err (!%p1812_p0)
}
  0x60   : > { %1628 = dma.hbm_to_vmem [thread:$0]  (!%p1968_p5), %s2252_s5, 16, %s1974_s28, [#allocation7]  }
  0x61   : > { %s1868_s24 = smov [#allocation11]   ;;  %s1816_s12 = scalar_lea.hbm %s2255_s8, 16 }
  0x62   : > { %s368_s27 = sshll.u32 %s1868_s24, 4  ;;  %p1817_p1 = scmp.ne.s32.totalorder %s2255_s8, %s1816_s12  ;;  %s369_s27 = int_to_ptr.vmem [resolvable:$true] %s368_s27 }
  0x63   : > { %p1823_p8 = scmp.lt.u32.totalorder %s1816_s12, %s2255_s8 }
  0x64   : > { %p1819_p4 = pnand %p1817_p1, %p1984_p7 }
  0x66   : > { %p1820_p6 = pneg %p1819_p4 }
  0x68   : > { %p1825_p9 = pnand %p1823_p8, %p1820_p6 }
  0x6a   : > { %1828 = shalt.err (!%p1825_p9)
}
  0x6b   : > { %s1829_s28 = scalar_lea.vmem %s369_s27, 16  ;;  %s1836_s25 = scalar_lea.vmem %s369_s27, 32 }
  0x6c   : > { %p1830_p10 = scmp.ne.s32.totalorder %s369_s27, %s1829_s28  ;;  %p1837_p13 = scmp.lt.s32.totalorder %s369_s27, %s369_s27 }
  0x6d   : > { %p1838_p0 = scmp.lt.s32.totalorder %s1836_s25, %s1829_s28 }
  0x6e   : > { %p1832_p11 = pnand %p1830_p10, %p1984_p7 }
  0x6f   : > { %p1839_p2 = por %p1838_p0, %p1837_p13 }
  0x70   : > { %p1833_p12 = pneg %p1832_p11 }
  0x72   : > { %p1840_p3 = pnand %p1839_p2, %p1833_p12 }
  0x74   : > { %1843 = shalt.err (!%p1840_p3)
}
  0x75   : > { %1634 = dma.hbm_to_vmem [thread:$0]  (!%p1968_p5), %s2255_s8, 16, %s369_s27, [#allocation10]  }
  0x76   : > { %p2264_p1 = scmp.ne.s32.totalorder %s2261_s21, 0 }
  0x77   : > { %p2265_p4 = scmp.eq.s32.totalorder (!%p2264_p1), %s1951_s20, 0 }
  0x78   : > { %388 = sbr.rel (%p2264_p1) target bundleno = 3525 (0xdc5), region = 56 }
  0x7f   : > { %1849 = dma.done.wait (%p2265_p4), [#allocation5], 16   ;;  %p2266_p7 = pmov %p2265_p4 }
  0x80   : > { %p2267_p6 = pmov %p2265_p4 }
  0x81   : > { %1851 = vsyncadd (%p2266_p7), [#allocation5], 4294967280 }
  0x82   : > { %1853 = dma.done.wait (%p2267_p6), [#allocation7], 32   ;;  %p2268_p2 = pmov %p2265_p4 }
  0x84   : > { %1855 = vsyncadd (%p2268_p2), [#allocation7], 4294967264  ;;  %p2269_p3 = pmov %p2268_p2 }
  0x85   : > { %p2270_p5 = pmov %p2268_p2 }
  0x86   : > { %1857 = dma.done.wait (%p2269_p3), [#allocation10], 32  }
  0x87   : > { %1859 = vsyncadd (%p2270_p5), [#allocation10], 4294967264  ;;  %p450_p8 = scmp.lt.s32.totalorder %s1951_s20, 1  ;;  %v1869_v0 = vmov 0.0   ;;  %vm1870_vm0 = vmmov 0   ;;  %v1674_v1 = vld [vmem:[%s2248_s1] sm:$0xff]  }
  0x88   : > { %1527 = vmatprep.subr.bf16.mxu0 %v1869_v0  ;;  %1531 = vmatprep.mubr.msk.bf16.mxu0 %vm1870_vm0, %v1869_v0  ;;  %v1675_v2 = vld [vmem:[%s2248_s1 + $0x8] sm:$0xff]   ;;  %vm492_vm1 = vcmask 261120   ;;  %vm536_vm2 = vcmask 785408   ;;  %s1871_s12 = smov 96   ;;  %s1872_s13 = smov 120   ;;  %vm545_vm3 = vcmask 64512  }
  0x89   : > { %s2272_s20 = smov (!%p450_p8, %s1951_s20), 1  ;;  %1535 = vmatprep.subr.bf16.mxu1 %v1869_v0  ;;  %1537 = vmatprep.mubr.msk.bf16.mxu1 %vm1870_vm0, %v1869_v0  ;;  %v1470_v5 = vld [vmem:[#allocation4] ss:$0 sm:$0xff]  ;;  %s1873_s14 = smov 88   ;;  %vm609_vm4 = vcmask 1043456   ;;  %vm654_vm5 = vcmask 60416  }
  0x8a   : > { %s2121_s21 = sshll.u32 %s2272_s20, 3  ;;  %1528 = vmatpush3.bf16.msra.mxu0 %v1674_v1  ;;  %s1874_s16 = smov 80   ;;  %vm779_vm6 = vcmask 126016   ;;  %vm904_vm7 = vcmask 191616   ;;  %vm1029_vm8 = vcmask 257216   ;;  %vm1197_vm9 = vcmask 31744  }
  0x8b   : > { %s453_s19 = scalar_lea.vmem %s2247_s0, %s2121_s21  ;;  %1529 = vmatprep.subr.bf16.mxu0 %v1869_v0  ;;  %s1875_s18 = smov 112  }
  0x8c   : > { %v2133_v3 = vld [vmem:[%s453_s19] sm:$0xff]  ;;  %s1876_s28 = smov 72   ;;  %s1877_s25 = smov 104  }
  0x8d   : > { %v468_v4 = vpack.c.bf16 %v2133_v3, %v2133_v3  ;;  %s1878_s22 = smov 56   ;;  %s1879_s23 = smov 64  }
  0x8e   : > { %1530 = vmatpush3.bf16.msra.mxu0 %v1675_v2  ;;  %s1880_s26 = smov 40   ;;  %s1881_s15 = smov 48  }
  0x8f   : > { %1541 = vmatprep.subr.bf16.mxu0 %v1869_v0  ;;  %s1882_s19 = smov 8   ;;  %s461_s30 = scalar_lea.vmem %s2257_s10, %s2121_s21 }
  0x91   : > { %1532 = vmatmul.mubr.msk.bf16.vlgmr.msra.gmra.mrb[0].mxu0 %vm492_vm1, %v468_v4 }
  0x92   : > { %1543 = vmatprep.mubr.msk.bf16.mxu0 %vm1870_vm0, %v1869_v0 }
 0x164   : > { %v530_v6 = vpop.f32.mrb[0].mxu0 }
 0x165   : > { %v531_v7 = vadd.f32 %v1470_v5, %v530_v6  ;;  %v1533_v8 = vpop.f32.mrb[1].mxu0 }
 0x166   : > { %v533_v9 = vpop.f32.mrb[2].mxu0 }
 0x167   : > { %537 = vst.msk [vmem:[#allocation2] sm:$0xff] %vm536_vm2, %v531_v7  ;;  %v1534_v10 = vpop.f32.mrb[3].mxu0  ;;  %vm1284_vm2 = vcmask 25600  }
 0x16e   : > { %v538_v11 = vld [vmem:[#allocation2] sm:$0xff] }
 0x16f   : > { %v2142_v12 = vpack.c.bf16 %v538_v11, %v538_v11  ;;  %v539_v13 = vmul.f32 0.35355338, %v538_v11 }
 0x171   : > { %543 = vrot.lane.b32.xlu0 %v2142_v12, %s1871_s12  ;;  %v540_v14 = vpack.c.bf16 %v539_v13, %v539_v13  ;;  %s1883_s12 = smov 16  }
 0x173   : > { %661 = vrot.lane.b32.xlu1 %v540_v14, %s1872_s13  ;;  %s1884_s13 = smov 24  }
 0x175   : > { %664 = vrot.lane.b32.xlu0 %v2142_v12, %s1873_s14 }
 0x177   : > { %789 = vrot.lane.b32.xlu1 %v2142_v12, %s1874_s16 }
 0x179   : > { %786 = vrot.lane.b32.xlu0 %v540_v14, %s1875_s18 }
 0x17b   : > { %914 = vrot.lane.b32.xlu1 %v2142_v12, %s1876_s28 }
 0x17d   : > { %911 = vrot.lane.b32.xlu0 %v540_v14, %s1877_s25 }
 0x1e3   : > { %v544_v15 = vpop.permute.xlu0 %543 }
 0x1e4   : > { %v550_v16 = vsel %vm545_vm3, %v544_v15, 0 }
 0x1e5   : > { %1536 = vmatpush3.bf16.xpose.msra.mxu1 %v550_v16  ;;  %v662_v18 = vpop.permute.xlu1 %661 }
 0x1e6   : > { %1547 = vmatprep.subr.bf16.mxu1 %v1869_v0 }
 0x1e7   : > { %v665_v17 = vpop.permute.xlu0 %664 }
 0x1e8   : > { %v670_v19 = vsel %vm545_vm3, %v665_v17, 0 }
 0x1e9   : > { %v790_v20 = vpop.permute.xlu1 %789 }
 0x1ea   : > { %v795_v21 = vsel %vm545_vm3, %v790_v20, 0 }
 0x1eb   : > { %v787_v23 = vpop.permute.xlu0 %786 }
 0x1ec   : > { %1538 = vmatmul.mubr.msk.bf16.vlgmr.msra.gmra.mrb[0].mxu1 %vm545_vm3, %v540_v14 }
 0x1ed   : > { %1548 = vmatpush3.bf16.xpose.msra.mxu1 %v670_v19  ;;  %1549 = vmatprep.mubr.msk.bf16.mxu1 %vm1870_vm0, %v1869_v0  ;;  %v915_v22 = vpop.permute.xlu1 %914 }
 0x1ee   : > { %1559 = vmatprep.subr.bf16.mxu1 %v1869_v0  ;;  %v920_v24 = vsel %vm545_vm3, %v915_v22, 0 }
 0x1ef   : > { %v912_v25 = vpop.permute.xlu0 %911 }
 0x1f4   : > { %1550 = vmatmul.mubr.msk.bf16.vlgmr.msra.gmra.mrb[4].mxu1 %vm545_vm3, %v662_v18 }
 0x1f5   : > { %1560 = vmatpush3.bf16.xpose.msra.mxu1 %v795_v21  ;;  %1561 = vmatprep.mubr.msk.bf16.mxu1 %vm1870_vm0, %v1869_v0 }
 0x1f6   : > { %1571 = vmatprep.subr.bf16.mxu1 %v1869_v0 }
 0x1fc   : > { %1562 = vmatmul.mubr.msk.bf16.vlgmr.msra.gmra.mrb[8].mxu1 %vm545_vm3, %v787_v23 }
 0x1fd   : > { %1572 = vmatpush3.bf16.xpose.msra.mxu1 %v920_v24  ;;  %1573 = vmatprep.mubr.msk.bf16.mxu1 %vm1870_vm0, %v1869_v0 }
 0x1fe   : > { %1583 = vmatprep.subr.bf16.mxu1 %v1869_v0 }
 0x204   : > { %1574 = vmatmul.mubr.msk.bf16.vlgmr.msra.gmra.mrb[12].mxu1 %vm545_vm3, %v912_v25 }
 0x205   : > { %1587 = vmatprep.mubr.msk.bf16.mxu1 %vm1870_vm0, %v1869_v0 }
 0x2bf   : > { %v586_v26 = vpop.f32.mrb[0].mxu1 }
 0x2c0   : > { %v1539_v27 = vpop.f32.mrb[1].mxu1  ;;  %v592_v28 = vsel %vm545_vm3, %v586_v26, -inf }
 0x2c1   : > { %593 = vmax.xlane.f32.xlu1 %v592_v28  ;;  %v589_v29 = vpop.f32.mrb[2].mxu1 }
 0x2c2   : > { %v1540_v30 = vpop.f32.mrb[3].mxu1 }
 0x2c7   : > { %v706_v31 = vpop.f32.mrb[4].mxu1 }
 0x2c8   : > { %v1551_v32 = vpop.f32.mrb[5].mxu1  ;;  %v712_v33 = vsel %vm545_vm3, %v706_v31, -inf }
 0x2c9   : > { %713 = vmax.xlane.f32.xlu0 %v712_v33  ;;  %v709_v34 = vpop.f32.mrb[6].mxu1 }
 0x2ca   : > { %v1552_v35 = vpop.f32.mrb[7].mxu1 }
 0x2cf   : > { %v831_v36 = vpop.f32.mrb[8].mxu1 }
 0x2d0   : > { %v1563_v37 = vpop.f32.mrb[9].mxu1  ;;  %v837_v38 = vsel %vm545_vm3, %v831_v36, -inf }
 0x2d1   : > { %838 = vmax.xlane.f32.xlu0 %v837_v38  ;;  %v834_v39 = vpop.f32.mrb[10].mxu1  ;;  %v1676_v38 = vld [vmem:[%s2250_s3] sm:$0xff]  }
 0x2d2   : > { %v1564_v40 = vpop.f32.mrb[11].mxu1  ;;  %1584 = vmatpush3.bf16.msra.mxu1 %v1676_v38  ;;  %v1677_v39 = vld [vmem:[%s2250_s3 + $0x8] sm:$0xff]  }
 0x2d3   : > { %1585 = vmatprep.subr.bf16.mxu1 %v1869_v0 }
 0x2d6   : > { %1586 = vmatpush3.bf16.msra.mxu1 %v1677_v39 }
 0x2d7   : > { %v956_v41 = vpop.f32.mrb[12].mxu1 }
 0x2d8   : > { %v1575_v42 = vpop.f32.mrb[13].mxu1  ;;  %v962_v43 = vsel %vm545_vm3, %v956_v41, -inf }
 0x2d9   : > { %963 = vmax.xlane.f32.xlu1 %v962_v43  ;;  %v959_v44 = vpop.f32.mrb[14].mxu1 }
 0x2da   : > { %v1576_v45 = vpop.f32.mrb[15].mxu1 }
 0x34e   : > { %v594_v46 = vpop.xlane.xlu1 %593 }
 0x34f   : > { %v595_v47 = vsub.f32 %v586_v26, %v594_v46 }
 0x351   : > { %v596_v48 = vmul.f32 1.442695, %v595_v47 }
 0x353   : > { %1680 = vpow2.f32 %v596_v48 }
 0x356   : > { %v714_v49 = vpop.xlane.xlu0 %713 }
 0x357   : > { %v715_v50 = vsub.f32 %v706_v31, %v714_v49 }
 0x359   : > { %v716_v51 = vmul.f32 1.442695, %v715_v50 }
 0x35b   : > { %1682 = vpow2.f32 %v716_v51 }
 0x35d   : > { %v1681_v52 = vpop.eup %1680 }
 0x35e   : > { %v839_v53 = vpop.xlane.xlu0 %838  ;;  %v598_v54 = vsel %vm545_vm3, %v1681_v52, 0.0 }
 0x35f   : > { %v840_v55 = vsub.f32 %v831_v36, %v839_v53  ;;  %599 = vadd.xlane.f32.xlu0 %v598_v54  ;;  %v1485_v54 = vld [vmem:[#allocation6] ss:$0 sm:$0xff] }
 0x361   : > { %v841_v56 = vmul.f32 1.442695, %v840_v55 }
 0x363   : > { %1684 = vpow2.f32 %v841_v56 }
 0x365   : > { %v1683_v57 = vpop.eup %1682 }
 0x366   : > { %v718_v58 = vsel %vm545_vm3, %v1683_v57, 0.0  ;;  %v964_v61 = vpop.xlane.xlu1 %963 }
 0x367   : > { %719 = vadd.xlane.f32.xlu1 %v718_v58  ;;  %v965_v62 = vsub.f32 %v956_v41, %v964_v61 }
 0x369   : > { %v966_v63 = vmul.f32 1.442695, %v965_v62 }
 0x36b   : > { %1686 = vpow2.f32 %v966_v63 }
 0x36d   : > { %v1685_v59 = vpop.eup %1684 }
 0x36e   : > { %v843_v60 = vsel %vm545_vm3, %v1685_v59, 0.0 }
 0x36f   : > { %844 = vadd.xlane.f32.xlu0 %v843_v60 }
 0x375   : > { %v1687_v1 = vpop.eup %1686 }
 0x376   : > { %v968_v2 = vsel %vm545_vm3, %v1687_v1, 0.0 }
 0x378   : > { %724 = vrot.lane.b32.xlu1 %v2142_v12, %s1878_s22 }
 0x385   : > { %604 = vrot.lane.b32.xlu0 %v2142_v12, %s1879_s23  ;;  %s457_s23 = scalar_lea.vmem %s2256_s9, %s2121_s21 }
 0x389   : > { %974 = vrot.lane.b32.xlu0 %v2142_v12, %s1880_s26  ;;  %s1469_s26 = sshll.u32 %s2272_s20, 1 }
 0x38a   : > { %s465_s24 = scalar_lea.vmem %s2258_s11, %s1469_s26 }
 0x39c   : > { %969 = vadd.xlane.f32.xlu1 %v968_v2 }
 0x3ad   : > { %849 = vrot.lane.b32.xlu1 %v2142_v12, %s1881_s15 }
 0x3ec   : > { %v600_v4 = vpop.xlane.xlu0 %599 }
 0x3ed   : > { %1688 = vrcp.f32 %v600_v4 }
 0x3f4   : > { %v720_v5 = vpop.xlane.xlu1 %719 }
 0x3f5   : > { %1690 = vrcp.f32 %v720_v5  ;;  %v1678_v5 = vld [vmem:[%s2254_s7] sm:$0xff]  }
 0x3f7   : > { %v1689_v6 = vpop.eup %1688 }
 0x3f8   : > { %v602_v8 = vmul.f32 %v1689_v6, %v1681_v52  ;;  %v725_v11 = vpop.permute.xlu1 %724 }
 0x3f9   : > { %v730_v15 = vsel %vm609_vm4, %v725_v11, 0 }
 0x3fa   : > { %v603_v13 = vpack.c.bf16 %v602_v8, %v602_v8 }
 0x3fc   : > { %v845_v7 = vpop.xlane.xlu0 %844 }
 0x3fd   : > { %1692 = vrcp.f32 %v845_v7 }
 0x3ff   : > { %v1691_v14 = vpop.eup %1690 }
 0x400   : > { %v605_v9 = vpop.permute.xlu0 %604  ;;  %v722_v12 = vmul.f32 %v1691_v14, %v1683_v57 }
 0x401   : > { %v611_v10 = vsel %vm609_vm4, %v605_v9, 0 }
 0x402   : > { %1542 = vmatpush3.bf16.msra.mxu0 %v611_v10  ;;  %v723_v16 = vpack.c.bf16 %v722_v12, %v722_v12  ;;  %v1489_v10 = vld [vmem:[#allocation8] ss:$0 sm:$0xff] }
 0x403   : > { %1553 = vmatprep.subr.bf16.mxu0 %v1869_v0 }
 0x404   : > { %v975_v22 = vpop.permute.xlu0 %974 }
 0x405   : > { %1544 = vmatmul.mubr.msk.bf16.vlgmr.msra.gmra.mrb[4].mxu0 %vm545_vm3, %v603_v13  ;;  %v980_v24 = vsel %vm609_vm4, %v975_v22, 0  ;;  %v1490_v13 = vld [vmem:[#allocation9] ss:$0 sm:$0xff] }
 0x406   : > { %1554 = vmatpush3.bf16.msra.mxu0 %v730_v15  ;;  %1555 = vmatprep.mubr.msk.bf16.mxu0 %vm1870_vm0, %v1869_v0 }
 0x407   : > { %1565 = vmatprep.subr.bf16.mxu0 %v1869_v0  ;;  %v1693_v17 = vpop.eup %1692 }
 0x408   : > { %v847_v19 = vmul.f32 %v1693_v17, %v1685_v59 }
 0x40a   : > { %v848_v23 = vpack.c.bf16 %v847_v19, %v847_v19 }
 0x40d   : > { %1556 = vmatmul.mubr.msk.bf16.vlgmr.msra.gmra.mrb[8].mxu0 %vm545_vm3, %v723_v16  ;;  %v1491_v16 = vld [vmem:[#allocation11] ss:$0 sm:$0xff] }
 0x40e   : > { %1567 = vmatprep.mubr.msk.bf16.mxu0 %vm1870_vm0, %v1869_v0 }
 0x429   : > { %v970_v18 = vpop.xlane.xlu1 %969 }
 0x42a   : > { %1694 = vrcp.f32 %v970_v18 }
 0x42d   : > { %v850_v20 = vpop.permute.xlu1 %849 }
 0x42e   : > { %v855_v21 = vsel %vm609_vm4, %v850_v20, 0 }
 0x42f   : > { %1566 = vmatpush3.bf16.msra.mxu0 %v855_v21 }
 0x430   : > { %1577 = vmatprep.subr.bf16.mxu0 %v1869_v0 }
 0x432   : > { %1568 = vmatmul.mubr.msk.bf16.vlgmr.msra.gmra.mrb[12].mxu0 %vm545_vm3, %v848_v23 }
 0x433   : > { %1578 = vmatpush3.bf16.msra.mxu0 %v980_v24  ;;  %1579 = vmatprep.mubr.msk.bf16.mxu0 %vm1870_vm0, %v1869_v0 }
 0x434   : > { %v1695_v25 = vpop.eup %1694  ;;  %1591 = vmatprep.subr.bf16.mxu0 %v1869_v0 }
 0x435   : > { %v972_v26 = vmul.f32 %v1695_v25, %v1687_v1 }
 0x437   : > { %v973_v27 = vpack.c.bf16 %v972_v26, %v972_v26 }
 0x43a   : > { %1580 = vmatmul.mubr.msk.bf16.vlgmr.msra.gmra.mrb[16].mxu0 %vm545_vm3, %v973_v27 }
 0x43b   : > { %1595 = vmatprep.mubr.msk.bf16.mxu0 %vm1870_vm0, %v1869_v0  ;;  %1592 = vmatpush3.bf16.msra.mxu0 %v1678_v5 }
 0x43c   : > { %1593 = vmatprep.subr.bf16.mxu0 %v1869_v0 }
 0x4d8   : > { %v647_v28 = vpop.f32.mrb[4].mxu0 }
 0x4d9   : > { %v653_v29 = vpack.c.bf16 %v647_v28, %v647_v28  ;;  %v1545_v30 = vpop.f32.mrb[5].mxu0 }
 0x4da   : > { %v650_v31 = vpop.f32.mrb[6].mxu0 }
 0x4db   : > { %655 = vst.msk [vmem:[#allocation3] sm:$0xf] %vm654_vm5, %v653_v29  ;;  %v1546_v32 = vpop.f32.mrb[7].mxu0 }
 0x4dc   : > { %v1209_v32 = vlaneseq }
 0x4e0   : > { %v766_v33 = vpop.f32.mrb[8].mxu0 }
 0x4e1   : > { %v1499_v34 = vpack.c.bf16 %v766_v33, %v766_v33  ;;  %v1557_v35 = vpop.f32.mrb[9].mxu0  ;;  %v1210_v33 = vand.u32 127, %v1209_v32 }
 0x4e2   : > { %v769_v36 = vpop.f32.mrb[10].mxu0 }
 0x4e3   : > { %776 = vrot.lane.b32.xlu1 %v1499_v34, %s1882_s19  ;;  %v1558_v37 = vpop.f32.mrb[11].mxu0 }
 0x505   : > { %v891_v40 = vpop.f32.mrb[12].mxu0 }
 0x506   : > { %v1500_v41 = vpack.c.bf16 %v891_v40, %v891_v40  ;;  %v1569_v42 = vpop.f32.mrb[13].mxu0 }
 0x507   : > { %v894_v43 = vpop.f32.mrb[14].mxu0 }
 0x508   : > { %901 = vrot.lane.b32.xlu0 %v1500_v41, %s1883_s12  ;;  %v1570_v44 = vpop.f32.mrb[15].mxu0 }
 0x50d   : > { %v1016_v45 = vpop.f32.mrb[16].mxu0 }
 0x50e   : > { %v1501_v46 = vpack.c.bf16 %v1016_v45, %v1016_v45  ;;  %v1581_v47 = vpop.f32.mrb[17].mxu0 }
 0x50f   : > { %v1019_v48 = vpop.f32.mrb[18].mxu0 }
 0x510   : > { %1026 = vrot.lane.b32.xlu1 %v1501_v46, %s1884_s13  ;;  %v1582_v49 = vpop.f32.mrb[19].mxu0 }
 0x555   : > { %v777_v50 = vpop.permute.xlu1 %776 }
 0x556   : > { %780 = vst.msk [vmem:[#allocation3] sm:$0xf] %vm779_vm6, %v777_v50 }
 0x57a   : > { %v902_v51 = vpop.permute.xlu0 %901 }
 0x57b   : > { %905 = vst.msk [vmem:[#allocation3] sm:$0xf] %vm904_vm7, %v902_v51 }
 0x582   : > { %v1027_v52 = vpop.permute.xlu1 %1026 }
 0x583   : > { %1030 = vst.msk [vmem:[#allocation3] sm:$0xf] %vm1029_vm8, %v1027_v52 }
 0x58a   : > { %v1031_v53 = vld [vmem:[#allocation3] sm:$0xf] }
 0x58b   : > { %1588 = vmatmul.mubr.msk.bf16.vlgmr.msra.gmra.mrb[16].mxu1 %vm492_vm1, %v1031_v53 }
 0x65e   : > { %v1092_v55 = vpop.f32.mrb[16].mxu1 }
 0x65f   : > { %v1093_v56 = vadd.f32 %v1485_v54, %v1092_v55  ;;  %v1589_v57 = vpop.f32.mrb[17].mxu1 }
 0x660   : > { %v1095_v58 = vpop.f32.mrb[18].mxu1 }
 0x661   : > { %v1590_v59 = vpop.f32.mrb[19].mxu1  ;;  %v1098_v60 = vadd.f32 %v1093_v56, %v2133_v3  ;;  %v1679_v3 = vld [vmem:[%s2254_s7 + $0x8] sm:$0xff]  }
 0x662   : > { %1594 = vmatpush3.bf16.msra.mxu0 %v1679_v3 }
 0x663   : > { %v1099_v61 = vsel %vm492_vm1, %v1098_v60, 0.0 }
 0x664   : > { %1100 = vadd.xlane.f32.xlu0 %v1099_v61 }
 0x6f1   : > { %v1101_v62 = vpop.xlane.xlu0 %1100 }
 0x6f2   : > { %v1103_v63 = vmul.f32 0.03125, %v1101_v62 }
 0x6f4   : > { %v1104_v1 = vsub.f32 %v1098_v60, %v1103_v63 }
 0x6f6   : > { %v1105_v2 = vmul.f32 %v1104_v1, %v1104_v1 }
 0x6f8   : > { %v1106_v4 = vsel %vm492_vm1, %v1105_v2, 0.0 }
 0x6f9   : > { %1107 = vadd.xlane.f32.xlu1 %v1106_v4 }
 0x786   : > { %v1108_v6 = vpop.xlane.xlu1 %1107 }
 0x787   : > { %v1109_v7 = vmul.f32 0.03125, %v1108_v6 }
 0x789   : > { %v1110_v8 = vadd.f32 1e-05, %v1109_v7 }
 0x78b   : > { %1696 = vrsqrt.f32 %v1110_v8 }
 0x795   : > { %v1697_v9 = vpop.eup %1696 }
 0x796   : > { %v1112_v11 = vmul.f32 %v1697_v9, %v1104_v1 }
 0x798   : > { %v1120_v14 = vmul.f32 %v1489_v10, %v1112_v11 }
 0x79a   : > { %v1128_v15 = vadd.f32 %v1490_v13, %v1120_v14 }
 0x79c   : > { %1129 = vst.msk [vmem:[%s457_s23] sm:$0xff] %vm492_vm1, %v1128_v15  ;;  %v1130_v12 = vpack.c.bf16 %v1128_v15, %v1128_v15 }
 0x79e   : > { %1596 = vmatmul.mubr.msk.bf16.vlgmr.msra.gmra.mrb[20].mxu0 %vm492_vm1, %v1130_v12  ;;  %vm1282_vm1 = vcmask 1040384  }
 0x871   : > { %v1191_v17 = vpop.f32.mrb[20].mxu0 }
 0x872   : > { %v1192_v18 = vadd.f32 %v1491_v16, %v1191_v17  ;;  %v1597_v19 = vpop.f32.mrb[21].mxu0 }
 0x873   : > { %v1194_v20 = vpop.f32.mrb[22].mxu0 }
 0x874   : > { %v1598_v21 = vpop.f32.mrb[23].mxu0  ;;  %v1198_v22 = vsel %vm1197_vm9, %v1192_v18, -inf }
 0x875   : > { %1199 = vmax.xlane.f32.xlu0 %v1198_v22 }
 0x902   : > { %v1200_v23 = vpop.xlane.xlu0 %1199 }
 0x903   : > { %v1201_v24 = vsub.f32 %v1192_v18, %v1200_v23 }
 0x905   : > { %v1202_v25 = vmul.f32 1.442695, %v1201_v24 }
 0x907   : > { %1698 = vpow2.f32 %v1202_v25 }
 0x911   : > { %v1699_v26 = vpop.eup %1698 }
 0x912   : > { %v1204_v27 = vsel %vm1197_vm9, %v1699_v26, 0.0 }
 0x913   : > { %1205 = vadd.xlane.f32.xlu0 %v1204_v27 }
 0x9a0   : > { %v1206_v28 = vpop.xlane.xlu0 %1205 }
 0x9a1   : > { %1700 = vrcp.f32 %v1206_v28 }
 0x9ab   : > { %v1701_v29 = vpop.eup %1700 }
 0x9ac   : > { %v1208_v30 = vmul.f32 %v1701_v29, %v1699_v26 }
 0x9ae   : > { %v1211_v31 = vsel %vm1197_vm9, %v1208_v30, -inf  ;;  %v1275_v60 = vsel %vm1197_vm9, %v1208_v30, 0.0 }
 0x9af   : > { %1212 = vmax.xlane.f32.xlu1 %v1211_v31  ;;  %v1276_v62 = vrot.slane %v1275_v60, 4 }
 0x9b1   : > { %v1277_v5 = vadd.f32 %v1276_v62, %v1275_v60 }
 0x9b3   : > { %v1278_v7 = vrot.slane %v1277_v5, 2 }
 0x9b5   : > { %v1279_v14 = vadd.f32 %v1278_v7, %v1277_v5 }
 0x9b7   : > { %v1280_v16 = vrot.slane %v1279_v14, 1 }
 0x9b9   : > { %v1281_v18 = vadd.f32 %v1280_v16, %v1279_v14 }
 0xa3c   : > { %v1213_v34 = vpop.xlane.xlu1 %1212 }
 0xa3d   : > { %vm1214_vm10 = vcmp.eq.f32.partialorder %v1208_v30, %v1213_v34 }
 0xa3e   : > { %v1215_v35 = vsel %vm1214_vm10, %v1210_v33, 4 }
 0xa3f   : > { %v1216_v36 = vsel %vm1197_vm9, %v1215_v35, 2147483647 }
 0xa40   : > { %v1218_v37 = vshra.s32 %v1216_v36, 16  ;;  %v1217_v39 = vand.u32 65535, %v1216_v36 }
 0xa42   : > { %v1220_v38 = vcvt.s32.f32 %v1218_v37  ;;  %v1219_v41 = vcvt.s32.f32 %v1217_v39 }
 0xa44   : > { %1221 = vmin.xlane.f32.xlu0 %v1220_v38 }
 0xad1   : > { %v1222_v40 = vpop.xlane.xlu0 %1221 }
 0xad2   : > { %vm1223_vm11 = vcmp.eq.f32.partialorder %v1220_v38, %v1222_v40  ;;  %v1228_v43 = vcvt.f32.s32 %v1222_v40 }
 0xad3   : > { %v1224_v42 = vsel %vm1223_vm11, %v1219_v41, inf }
 0xad4   : > { %1225 = vmin.xlane.f32.xlu1 %v1224_v42  ;;  %v1229_v45 = vshll.u32 %v1228_v43, 16 }
 0xb61   : > { %v1226_v44 = vpop.xlane.xlu1 %1225 }
 0xb62   : > { %v1227_v46 = vcvt.f32.s32 %v1226_v44 }
 0xb64   : > { %v1230_v47 = vadd.s32 %v1229_v45, %v1227_v46 }
 0xb66   : > { %vm1231_vm12 = vcmp.eq.s32.totalorder %v1210_v33, %v1230_v47 }
 0xb67   : > { %v1495_v48 = vsel %vm1231_vm12, 1.0, %v1869_v0 }
 0xb68   : > { %vm1235_vm13 = vcmp.gt.f32.partialorder %v1495_v48, 0.0 }
 0xb69   : > { %v1236_v49 = vsel %vm1235_vm13, -inf, %v1208_v30 }
 0xb6a   : > { %v1237_v50 = vsel %vm1197_vm9, %v1236_v49, -inf }
 0xb6b   : > { %1238 = vmax.xlane.f32.xlu0 %v1237_v50 }
 0xbf8   : > { %v1239_v51 = vpop.xlane.xlu0 %1238 }
 0xbf9   : > { %vm1240_vm14 = vcmp.eq.f32.partialorder %v1236_v49, %v1239_v51 }
 0xbfa   : > { %v1241_v52 = vsel %vm1240_vm14, %v1210_v33, 4 }
 0xbfb   : > { %v1242_v53 = vsel %vm1197_vm9, %v1241_v52, 2147483647 }
 0xbfc   : > { %v1244_v54 = vshra.s32 %v1242_v53, 16  ;;  %v1243_v56 = vand.u32 65535, %v1242_v53 }
 0xbfe   : > { %v1246_v55 = vcvt.s32.f32 %v1244_v54  ;;  %v1245_v58 = vcvt.s32.f32 %v1243_v56 }
 0xc00   : > { %1247 = vmin.xlane.f32.xlu1 %v1246_v55 }
 0xc8d   : > { %v1248_v57 = vpop.xlane.xlu1 %1247 }
 0xc8e   : > { %vm1249_vm15 = vcmp.eq.f32.partialorder %v1246_v55, %v1248_v57  ;;  %v1254_v61 = vcvt.f32.s32 %v1248_v57 }
 0xc8f   : > { %v1250_v59 = vsel %vm1249_vm15, %v1245_v58, inf }
 0xc90   : > { %1251 = vmin.xlane.f32.xlu0 %v1250_v59  ;;  %v1255_v1 = vshll.u32 %v1254_v61, 16 }
 0xd1d   : > { %v1252_v63 = vpop.xlane.xlu0 %1251 }
 0xd1e   : > { %v1253_v2 = vcvt.f32.s32 %v1252_v63 }
 0xd20   : > { %v1256_v4 = vadd.s32 %v1255_v1, %v1253_v2 }
 0xd22   : > { %vm1257_vm0 = vcmp.eq.s32.totalorder %v1210_v33, %v1256_v4 }
 0xd23   : > { %v1496_v3 = vsel %vm1257_vm0, 1.0, %v1869_v0 }
 0xd24   : > { %v1260_v6 = vadd.f32 %v1496_v3, %v1495_v48 }
 0xd26   : > { %v1261_v8 = vmul.f32 %v1260_v6, %v1208_v30  ;;  %v1268_v9 = vsel %vm1197_vm9, %v1260_v6, 0.0 }
 0xd27   : > { %v1269_v10 = vrot.slane %v1268_v9, 4 }
 0xd28   : > { %v1262_v11 = vsel %vm1197_vm9, %v1261_v8, 0.0 }
 0xd29   : > { %v1270_v13 = vadd.f32 %v1269_v10, %v1268_v9  ;;  %1263 = vadd.xlane.f32.xlu1 %v1262_v11 }
 0xd2b   : > { %v1271_v15 = vrot.slane %v1270_v13, 2 }
 0xd2d   : > { %v1272_v12 = vadd.f32 %v1271_v15, %v1270_v13 }
 0xd2f   : > { %v1273_v17 = vrot.slane %v1272_v12, 1 }
 0xd31   : > { %v1274_v0 = vadd.f32 %v1273_v17, %v1272_v12 }
 0xd33   : > { %v1283_v19 = vsel %vm1282_vm1, %v1274_v0, %v1281_v18 }
 0xd34   : > { %1285 = vst.msk [vmem:[%s465_s24] sm:$0x3] %vm1284_vm2, %v1283_v19 }
 0xdb6   : > { %v1264_v20 = vpop.xlane.xlu1 %1263 }
 0xdb7   : > { %1702 = vrcp.f32 %v1264_v20 }
 0xdc1   : > { %v1703_v21 = vpop.eup %1702 }
 0xdc2   : > { %v1266_v22 = vmul.f32 %v1703_v21, %v1261_v8 }
 0xdc4   : > { %1267 = vst.msk [vmem:[%s461_s30] sm:$0xff] %vm1197_vm9, %v1266_v22 }
 0xdc5 PF: > { %s25_s17 = sadd.s32 1, %s1862_s17  }
 0xdc6   : > { %p22_p9 = scmp.ge.s32.totalorder %s25_s17, 4  }
 0xdc8   :  { %24 = sbr.rel (!%p22_p9) target bundleno = 3 (0x3), region = 131 }
 0xdcf   :  { %1333 = vsyncpa [#allocation5], 1 }
 0xdd0   :  { %1335 = vsyncpa [#allocation5 + $0x1], 1 }
 0xdd1   :  { %1336 = vsyncpa [#allocation7], 1 }
 0xdd2   :  { %1337 = vsyncpa [#allocation10], 1 }

// kernel: encoder_block.3
= control target key start
LH: loop header
LB: loop body
LE: loop exit
PB: predicated region body
PF: predicated region fallthrough
CT: control target
= control target key end

     0   :  { %13 = vsyncpa [#allocation4], 0  ;;  %s1043_s27 = smov 0   ;;  %s1045_s28 = smov 0   ;;  %s1179_s0 = inlined_call_operand.vmem [shape: f32[16,32], index: 0, kind: input, shape index: {}]   ;;  %s1180_s1 = inlined_call_operand.vmem [shape: f32[4,16,1], index: 1, kind: input, shape index: {}]   ;;  %s1181_s2 = inlined_call_operand.vmem [shape: bf16[4,32,128], index: 2, kind: input, shape index: {}]   ;;  %s1182_s3 = inlined_call_operand.vmem [shape: f32[4,1,128], index: 3, kind: input, shape index: {}]   ;;  %s1183_s4 = inlined_call_operand.vmem [shape: bf16[4,128,32], index: 4, kind: input, shape index: {}]   ;;  %s1184_s5 = inlined_call_operand.vmem [shape: f32[4,1,32], index: 5, kind: input, shape index: {}]   ;;  %s1185_s6 = inlined_call_operand.vmem [shape: f32[1,32], index: 6, kind: input, shape index: {}]   ;;  %s1186_s7 = inlined_call_operand.vmem [shape: f32[1,32], index: 7, kind: input, shape index: {}]   ;;  %s1187_s8 = inlined_call_operand.hbm [shape: f32[16,32], index: 8, kind: output, shape index: {}]  }
   0x1   :  { %s1047_s29 = smov 0  }
   0x2 LB: > { %s28_s9 = sadd.s32 1, %s985_s28  ;;  %p814_p1 = scmp.ge.s32.totalorder %s989_s29, 1  ;;  %s989_s29 = sphi %s1047_s29, %s19_s29   ;;  %s985_s28 = sphi %s1045_s28, %s1191_s28   ;;  %s981_s27 = sphi %s1043_s27, %s1190_s27  }
   0x3   : > { %p29_p0 = scmp.ge.s32.totalorder %s28_s9, 4  ;;  %p329_p2 = scmp.lt.s32.totalorder %s989_s29, 5 }
   0x5   : > { %s1193_s9 = smov (%p29_p0, %s28_s9), 0  ;;  %p330_p3 = pnand %p814_p1, %p329_p2 }
   0x6   : > { %p390_p4 = scmp.lt.s32.totalorder (!%p330_p3), %s981_s27, 3  ;;  %p821_p5 = scmp.ne.s32.totalorder (!%p330_p3), %s981_s27, 0 }
   0x7   : > { %333 = sbr.rel (%p330_p3) target bundleno = 823 (0x337), region = 52 }
   0xe   : > { %s1066_s10 = scalar_select %p390_p4, %s981_s27, 3 }
   0xf   : > { %420 = sbr.rel (%p821_p5) target bundleno = 22 (0x16), region = 56  ;;  %vm421_vm0 = vcmask (!%p821_p5), 261120   ;;  %v991_v0 = vmov (!%p821_p5), 0.0  }
  0x10   : > { %s842_s11 = sshll.u32 %s1066_s10, 4  ;;  %s406_s14 = scalar_lea.vmem %s1182_s3, %s1066_s10  ;;  %422 = vst.msk [vmem:[#allocation2] sm:$0xff] (!%p821_p5), %vm421_vm0, %v991_v0  ;;  %423 = vst.msk [vmem:[#allocation2 + $0x8] sm:$0xff] (!%p821_p5), %vm421_vm0, %v991_v0 }
  0x11   : > { %s1076_s17 = scalar_lea.vmem %s1180_s1, %s842_s11  ;;  %s403_s20 = scalar_lea.vmem %s1181_s2, %s842_s11 }
  0x12   : > { %s844_s21 = sshll.u32 %s1066_s10, 6  ;;  %s414_s24 = scalar_lea.vmem %s1184_s5, %s1066_s10 }
  0x13   : > { %s1089_s30 = scalar_lea.vmem %s1183_s4, %s844_s21 }
  0x16 PF: > { %v923_v1 = vld [vmem:[%s403_s20] sm:$0xff]   ;;  %v992_v2 = vmov 0.0   ;;  %v924_v3 = vld [vmem:[%s403_s20 + $0x8] sm:$0xff]   ;;  %vm993_vm1 = vmmov 0   ;;  %vm452_vm2 = vcmask 261120   ;;  %v927_v9 = vld [vmem:[%s1089_s30 + $0x10] sm:$0xff]  }
  0x17   : > { %857 = vmatprep.subr.bf16.mxu0 %v992_v2  ;;  %865 = vmatprep.subr.bf16.mxu1 %v992_v2  ;;  %v1095_v4 = vld [vmem:[%s1179_s0] sm:$0xff]  ;;  %v1100_v5 = vld [vmem:[%s1179_s0 + $0x8] sm:$0xff]  ;;  %v928_v10 = vld [vmem:[%s1089_s30 + $0x18] sm:$0xff]   ;;  %v994_v16 = vmov 0   ;;  %p835_p6 = scmp.ne.s32.totalorder %s981_s27, 3 }
  0x18   : > { %858 = vmatpush3.bf16.msra.mxu0 %v923_v1  ;;  %861 = vmatprep.mubr.msk.bf16.mxu0 %vm993_vm1, %v992_v2  ;;  %v925_v6 = vld [vmem:[%s1089_s30] sm:$0xff]   ;;  %v426_v7 = vpack.c.bf16 %v1100_v5, %v1095_v4  ;;  %v926_v8 = vld [vmem:[%s1089_s30 + $0x8] sm:$0xff]   ;;  %v931_v13 = vld [vmem:[%s1089_s30 + $0x30] sm:$0xff]  }
  0x19   : > { %859 = vmatprep.subr.bf16.mxu0 %v992_v2  ;;  %881 = vmatprep.mubr.msk.bf16.mxu1 %vm993_vm1, %v992_v2  ;;  %v929_v11 = vld [vmem:[%s1089_s30 + $0x20] sm:$0xff]   ;;  %v930_v12 = vld [vmem:[%s1089_s30 + $0x28] sm:$0xff]   ;;  %v932_v14 = vld [vmem:[%s1089_s30 + $0x38] sm:$0xff]  }
  0x1a   : > { %866 = vmatpush3.bf16.msra.mxu1 %v925_v6  ;;  %v427_v15 = vld [vmem:[%s1076_s17] sm:$0xff]  ;;  %922 = vset.pattern.permute.xlu0 %v994_v16  ;;  %v428_v17 = vld [vmem:[%s1076_s17 + $0x8] sm:$0xff] }
  0x1b   : > { %867 = vmatprep.subr.bf16.mxu1 %v992_v2  ;;  %616 = vperm.xlu0 %922, %v427_v15   ;;  %v822_v18 = vld [vmem:[%s406_s14] ss:$0 sm:$0xff]  ;;  %v613_v39 = vld [vmem:[#allocation2 + $0x8] sm:$0xff] }
  0x1c   : > { %860 = vmatpush3.bf16.msra.mxu0 %v924_v3  ;;  %v826_v29 = vld [vmem:[%s414_s24] ss:$0 sm:$0xff] }
  0x1d   : > { %v612_v33 = vld [vmem:[#allocation2] sm:$0xff] }
  0x1e   : > { %868 = vmatpush3.bf16.msra.mxu1 %v926_v8 }
  0x1f   : > { %862 = vmatmul.mubr.msk.bf16.vlgmr.msra.gmra.mrb[0].mxu0 %vm452_vm2, %v426_v7  ;;  %869 = vmatprep.subr.bf16.mxu1 %v992_v2 }
  0x20   : > { %621 = vperm.xlu0 %922, %v428_v17  }
  0x22   : > { %870 = vmatpush3.bf16.msra.mxu1 %v927_v9 }
  0x23   : > { %871 = vmatprep.subr.bf16.mxu1 %v992_v2 }
  0x26   : > { %872 = vmatpush3.bf16.msra.mxu1 %v928_v10 }
  0x27   : > { %873 = vmatprep.subr.bf16.mxu1 %v992_v2 }
  0x2a   : > { %874 = vmatpush3.bf16.msra.mxu1 %v929_v11 }
  0x2b   : > { %875 = vmatprep.subr.bf16.mxu1 %v992_v2 }
  0x2e   : > { %876 = vmatpush3.bf16.msra.mxu1 %v930_v12 }
  0x2f   : > { %877 = vmatprep.subr.bf16.mxu1 %v992_v2 }
  0x32   : > { %878 = vmatpush3.bf16.msra.mxu1 %v931_v13 }
  0x33   : > { %879 = vmatprep.subr.bf16.mxu1 %v992_v2  ;;  %v836_v2 = vld [vmem:[%s1185_s6] ss:$0 sm:$0xff] (!%p835_p6) }
  0x36   : > { %880 = vmatpush3.bf16.msra.mxu1 %v932_v14 }
  0x9a   : > { %v617_v28 = vpop.permute.xlu0 %616 }
  0x9f   : > { %v622_v38 = vpop.permute.xlu0 %621 }
  0xf2   : > { %v490_v19 = vpop.f32.mrb[0].mxu0 }
  0xf3   : > { %v491_v20 = vadd.f32 %v822_v18, %v490_v19  ;;  %v863_v21 = vpop.f32.mrb[1].mxu0 }
  0xf4   : > { %v493_v22 = vpop.f32.mrb[2].mxu0 }
  0xf5   : > { %v494_v23 = vadd.f32 %v822_v18, %v493_v22  ;;  %v864_v24 = vpop.f32.mrb[3].mxu0  ;;  %v497_v25 = vmax.f32 %v491_v20, 0.0 }
  0xf7   : > { %v498_v26 = vmax.f32 %v494_v23, 0.0 }
  0xf9   : > { %v499_v27 = vpack.c.bf16 %v498_v26, %v497_v25 }
  0xfb   : > { %882 = vmatmul.mubr.bf16.vlgmr.msra.gmra.mrb[0].mxu1 %v499_v27 }
 0x1ce   : > { %v605_v30 = vpop.f32.mrb[0].mxu1 }
 0x1cf   : > { %v606_v31 = vadd.f32 %v826_v29, %v605_v30  ;;  %v883_v32 = vpop.f32.mrb[1].mxu1 }
 0x1d0   : > { %v608_v34 = vpop.f32.mrb[2].mxu1 }
 0x1d1   : > { %v624_v35 = vmul.f32 %v617_v28, %v606_v31  ;;  %v609_v36 = vadd.f32 %v826_v29, %v608_v34  ;;  %v884_v37 = vpop.f32.mrb[3].mxu1  ;;  %633 = sbr.rel (%p835_p6) target bundleno = 797 (0x31d), region = 60 }
 0x1d3   : > { %v626_v40 = vadd.f32 %v624_v35, %v612_v33  ;;  %v625_v41 = vmul.f32 %v622_v38, %v609_v36 }
 0x1d5   : > { %628 = vst.msk [vmem:[#allocation2] sm:$0xff] %vm452_vm2, %v626_v40  ;;  %v627_v42 = vadd.f32 %v625_v41, %v613_v39 }
 0x1d7   : > { %629 = vst.msk [vmem:[#allocation2 + $0x8] sm:$0xff] %vm452_vm2, %v627_v42 }
 0x1dc   : > { %v634_v43 = vld [vmem:[#allocation2] sm:$0xff] }
 0x1dd   : > { %v636_v45 = vadd.f32 %v634_v43, %v1095_v4  ;;  %v837_v4 = vld [vmem:[%s1186_s7] ss:$0 sm:$0xff] }
 0x1de   : > { %v635_v44 = vld [vmem:[#allocation2 + $0x8] sm:$0xff] }
 0x1df   : > { %v637_v46 = vadd.f32 %v635_v44, %v1100_v5  ;;  %v638_v47 = vsel %vm452_vm2, %v636_v45, 0.0 }
 0x1e0   : > { %639 = vadd.xlane.f32.xlu0 %v638_v47 }
 0x1e1   : > { %v641_v48 = vsel %vm452_vm2, %v637_v46, 0.0 }
 0x1e4   : > { %642 = vadd.xlane.f32.xlu0 %v641_v48 }
 0x26d   : > { %v640_v49 = vpop.xlane.xlu0 %639 }
 0x26e   : > { %v645_v50 = vmul.f32 0.03125, %v640_v49 }
 0x270   : > { %v647_v51 = vsub.f32 %v636_v45, %v645_v50 }
 0x271   : > { %v643_v52 = vpop.xlane.xlu0 %642 }
 0x272   : > { %v646_v53 = vmul.f32 0.03125, %v643_v52  ;;  %v649_v54 = vmul.f32 %v647_v51, %v647_v51 }
 0x274   : > { %v648_v55 = vsub.f32 %v637_v46, %v646_v53  ;;  %v651_v56 = vsel %vm452_vm2, %v649_v54, 0.0 }
 0x275   : > { %652 = vadd.xlane.f32.xlu1 %v651_v56 }
 0x276   : > { %v650_v57 = vmul.f32 %v648_v55, %v648_v55 }
 0x278   : > { %v654_v58 = vsel %vm452_vm2, %v650_v57, 0.0 }
 0x279   : > { %655 = vadd.xlane.f32.xlu1 %v654_v58 }
 0x302   : > { %v653_v59 = vpop.xlane.xlu1 %652 }
 0x303   : > { %v657_v60 = vmul.f32 0.03125, %v653_v59 }
 0x305   : > { %v659_v61 = vadd.f32 1e-05, %v657_v60 }
 0x306   : > { %v656_v62 = vpop.xlane.xlu1 %655 }
 0x307   : > { %933 = vrsqrt.f32 %v659_v61  ;;  %v658_v63 = vmul.f32 0.03125, %v656_v62 }
 0x309   : > { %v660_v0 = vadd.f32 1e-05, %v658_v63 }
 0x30b   : > { %935 = vrsqrt.f32 %v660_v0 }
 0x311   : > { %v934_v1 = vpop.eup %933 }
 0x312   : > { %v663_v3 = vmul.f32 %v934_v1, %v647_v51 }
 0x314   : > { %v672_v5 = vmul.f32 %v836_v2, %v663_v3 }
 0x315   : > { %v936_v6 = vpop.eup %935 }
 0x316   : > { %v681_v7 = vadd.f32 %v837_v4, %v672_v5  ;;  %v664_v8 = vmul.f32 %v936_v6, %v648_v55 }
 0x318   : > { %683 = vst.msk [vmem:[#allocation3] sm:$0xff] %vm452_vm2, %v681_v7  ;;  %v673_v9 = vmul.f32 %v836_v2, %v664_v8 }
 0x31a   : > { %v682_v10 = vadd.f32 %v837_v4, %v673_v9 }
 0x31c   : > { %684 = vst.msk [vmem:[#allocation3 + $0x8] sm:$0xff] %vm452_vm2, %v682_v10 }
 0x31d PF: > { %s1188_s20 = sadd.s32 4294967295, %s989_s29   ;;  %s995_s22 = smov [#allocation3]  }
 0x31e   : > { %p1144_p7 = scmp.eq.s32.totalorder %s1188_s20, 3  ;;  %s694_s23 = sshll.u32 %s995_s22, 4  ;;  %s695_s23 = int_to_ptr.vmem [resolvable:$true] %s694_s23 }
 0x31f   : > { %s937_s24 = scalar_lea.vmem %s695_s23, 256  ;;  %p944_p11 = scmp.lt.s32.totalorder %s695_s23, %s695_s23 }
 0x320   : > { %p938_p8 = scmp.ne.s32.totalorder %s695_s23, %s937_s24  ;;  %p945_p12 = scmp.lt.s32.totalorder %s937_s24, %s937_s24 }
 0x322   : > { %p939_p9 = pnand %p938_p8, %p1144_p7  ;;  %p946_p13 = por %p945_p12, %p944_p11 }
 0x324   : > { %p940_p10 = pneg %p939_p9 }
 0x326   : > { %p947_p0 = pnand %p946_p13, %p940_p10 }
 0x328   : > { %950 = shalt.err (!%p947_p0)
}
 0x329   : > { %s951_s11 = scalar_lea.hbm %s1187_s8, 256 }
 0x32a   : > { %p952_p1 = scmp.ne.s32.totalorder %s1187_s8, %s951_s11  ;;  %p957_p4 = scmp.lt.u32.totalorder %s951_s11, %s1187_s8 }
 0x32c   : > { %p953_p2 = pnand %p952_p1, %p1144_p7 }
 0x32e   : > { %p954_p3 = pneg %p953_p2 }
 0x330   : > { %p959_p5 = pnand %p957_p4, %p954_p3 }
 0x332   : > { %962 = shalt.err (!%p959_p5)
}
 0x333   : > { %s996_s18 = smov 128   ;;  %s997_s30 = smov 8  }
 0x334   : > { %886 = dma.vmem_to_hbm [thread:$0]  (%p1144_p7), %s695_s23, 256, %s1187_s8, [#allocation4], %s996_s18, %s996_s18, %s997_s30  }
 0x335   : > { %976 = dma.done.wait (%p1144_p7), [#allocation4], 256  }
 0x336   : > { %978 = vsyncadd (%p1144_p7), [#allocation4], 4294967040 }
 0x337 PF: > { %s19_s29 = sadd.s32 1, %s989_s29   ;;  %s1190_s27 = smov %s985_s28 }
 0x338   : > { %p16_p6 = scmp.ge.s32.totalorder %s19_s29, 6   ;;  %s1191_s28 = smov %s1193_s9 }
 0x33a   :  { %18 = sbr.rel (!%p16_p6) target bundleno = 2 (0x2), region = 103 }
 0x341   :  { %710 = vsyncpa [#allocation4], 1 }
 0x342   :  { %712 = vsyncpa [#allocation4 + $0x1], 1 }

</bundles_post_ra>
